<compile_context>
chip_gen: v6e
topology: v6e:2x2x1
jax: 0.10.0
libtpu: 0.0.40
codegen_flags: <defaults>
</compile_context>

<pallas_src>
import math

import jax
import jax.numpy as jnp
from jax import lax
from jax.experimental import pallas as pl
from jax.experimental.pallas import tpu as pltpu


# ------------------------------ in-kernel helpers ------------------------------ #

def _layer_norm(z, g, b, eps=1e-5):
    inv_d = 1.0 / z.shape[-1]
    mu = jnp.sum(z, axis=-1, keepdims=True) * inv_d
    zc = z - mu
    var = jnp.sum(zc * zc, axis=-1, keepdims=True) * inv_d
    return zc * lax.rsqrt(var + eps) * g + b


def _make_yate_kernel(num_heads):
    def kernel(x_in_ref, e_in_ref, s_ref, t_ref, hsel_ref,
               wq_ref, bq_ref, wkve_ref, bkve_ref,
               w1x_ref, b1x_ref, w2x_ref, b2x_ref,
               w1e_ref, b1e_ref, w2e_ref, b2e_ref,
               g1_ref, bn1_ref, g2_ref, bn2_ref,
               wout_ref, bout_ref,
               out_ref,
               x_vmem, e_vmem):
        layer = pl.program_id(0)

        # Load the graph state into VMEM scratch once; it persists across layers.
        @pl.when(layer == 0)
        def _init():
            x_vmem[...] = x_in_ref[...]
            e_vmem[...] = e_in_ref[...]

        x = x_vmem[...]              # [N, D]  node features
        ef = e_vmem[...]             # [E, D]  edge features
        S = s_ref[...]               # [E, N]  one-hot of src nodes
        T = t_ref[...]               # [E, N]  one-hot of dst nodes
        D = x.shape[-1]
        H = num_heads
        C = D // H
        scale = 1.0 / math.sqrt(C)

        # ----------------------- YATE_Attention ----------------------- #
        # Z = edge_feat * x[edge_index[1]]   (gather via one-hot matmul on MXU)
        Z = jnp.dot(T, x, preferred_element_type=jnp.float32) * ef        # [E, D]

        Q = jnp.dot(x, wq_ref[...], preferred_element_type=jnp.float32) + bq_ref[...]      # [N, D]
        # Fused K | V | lin_edge projection of Z: one [E,D] x [D,3D] matmul.
        KVE = jnp.dot(Z, wkve_ref[...], preferred_element_type=jnp.float32) + bkve_ref[...]  # [E, 3D]
        K = KVE[:, :D]
        V = KVE[:, D:2 * D]
        e_attn = KVE[:, 2 * D:]

        # Per-edge Q[src] gather (MXU) and per-edge/per-head logits via head masks.
        q_src = jnp.dot(S, Q, preferred_element_type=jnp.float32)          # [E, D]
        qk = q_src * K                                                     # [E, D]

        attn_v = jnp.zeros_like(V)                                         # accumulates a_e * V
        for h in range(H):                                                 # H is small: unrolled
            mask_h = hsel_ref[h:h + 1, :]                                  # [1, D] 1s on head-h lanes
            dh = jnp.sum(qk * mask_h, axis=-1, keepdims=True)              # [E, 1] per-edge logit
            # dense scatter: L[src_e, dst_e] = d_e
            L = lax.dot_general(S * dh, T, (((0,), (0,)), ((), ())),
                                preferred_element_type=jnp.float32) * scale  # [N, N]
            # matches torch.where(att_logit != 0, att_logit, -9e15)
            L = jnp.where(L != 0.0, L, -9.0e15)
            m = jnp.max(L, axis=-1, keepdims=True)
            p = jnp.exp(L - m)
            A = p * pl.reciprocal(jnp.sum(p, axis=-1, keepdims=True), approx=True)  # row softmax
            # gather per-edge attention coefficient A[src_e, dst_e]
            G = jnp.dot(S, A, preferred_element_type=jnp.float32)          # [E, N]
            a_h = jnp.sum(G * T, axis=-1, keepdims=True)                   # [E, 1]
            attn_v = attn_v + (a_h * mask_h) * V                           # scale head-h lanes of V

        # aggregate per src node: out[n] = sum over edges with src=n of a_e * V_e
        attn_x = lax.dot_general(S, attn_v, (((0,), (0,)), ((), ())),
                                 preferred_element_type=jnp.float32)       # [N, D]

        # --------------------- residual + norm1 ----------------------- #
        g1 = g1_ref[...]
        bn1 = bn1_ref[...]
        x = _layer_norm(x + attn_x, g1, bn1)
        ef = _layer_norm(ef + e_attn, g1, bn1)

        # ------------------ FFNs + norm2 (dropout = id) ---------------- #
        g2 = g2_ref[...]
        bn2 = bn2_ref[...]
        hx = jnp.maximum(
            jnp.dot(x, w1x_ref[...], preferred_element_type=jnp.float32) + b1x_ref[...], 0.0)
        fx = jnp.dot(hx, w2x_ref[...], preferred_element_type=jnp.float32) + b2x_ref[...]
        x = _layer_norm(x + fx, g2, bn2)

        he = jnp.maximum(
            jnp.dot(ef, w1e_ref[...], preferred_element_type=jnp.float32) + b1e_ref[...], 0.0)
        fe = jnp.dot(he, w2e_ref[...], preferred_element_type=jnp.float32) + b2e_ref[...]
        ef = _layer_norm(ef + fe, g2, bn2)

        x_vmem[...] = x
        e_vmem[...] = ef

        # --------------- final projection (last layer only) ------------ #
        # F.dropout(p=0.5) in inference mode -> identity
        @pl.when(layer == pl.num_programs(0) - 1)
        def _final():
            out_ref[...] = (jnp.dot(x, wout_ref[...], preferred_element_type=jnp.float32)
                            + bout_ref[...])

    return kernel


# --------------------------------- wrapper ------------------------------------ #

def yate_encode(params, x, edge_index, edge_feat, num_heads):
    N, D = x.shape
    E = edge_feat.shape[0]
    L = params["wq"].shape[0]
    O = params["w_out"].shape[-1]
    assert D % num_heads == 0
    C = D // num_heads
    F = params["w1x"].shape[-1]

    nodes = jnp.arange(N)
    src_oh = (edge_index[0][:, None] == nodes[None, :]).astype(jnp.float32)   # [E, N]
    dst_oh = (edge_index[1][:, None] == nodes[None, :]).astype(jnp.float32)   # [E, N]
    # head selector: hsel[h, j] = 1.0 iff feature lane j belongs to head h
    hsel = (jnp.arange(num_heads)[:, None]
            == (jnp.arange(D)[None, :] // C)).astype(jnp.float32)             # [H, D]

    def full2(shape):
        return pl.BlockSpec(shape, lambda l: (0, 0))

    def per_layer(shape):
        return pl.BlockSpec((None,) + tuple(shape), lambda l: (l, 0, 0))

    in_specs = [
        full2((N, D)),                # x
        full2((E, D)),                # edge_feat
        full2((E, N)),                # src_oh
        full2((E, N)),                # dst_oh
        full2((num_heads, D)),        # hsel
        per_layer((D, D)),            # wq
        per_layer((1, D)),            # bq
        per_layer((D, 3 * D)),        # wkve (K|V|edge fused)
        per_layer((1, 3 * D)),        # bkve
        per_layer((D, F)),            # w1x
        per_layer((1, F)),            # b1x
        per_layer((F, D)),            # w2x
        per_layer((1, D)),            # b2x
        per_layer((D, F)),            # w1e
        per_layer((1, F)),            # b1e
        per_layer((F, D)),            # w2e
        per_layer((1, D)),            # b2e
        per_layer((1, D)),            # g1
        per_layer((1, D)),            # bn1
        per_layer((1, D)),            # g2
        per_layer((1, D)),            # bn2
        full2((D, O)),                # w_out
        full2((1, O)),                # b_out
    ]

    return pl.pallas_call(
        _make_yate_kernel(num_heads),
        out_shape=jax.ShapeDtypeStruct((N, O), jnp.float32),
        grid=(L,),
        in_specs=in_specs,
        out_specs=pl.BlockSpec((N, O), lambda l: (0, 0)),
        scratch_shapes=[pltpu.VMEM((N, D), jnp.float32),
                        pltpu.VMEM((E, D), jnp.float32)],
        compiler_params=pltpu.CompilerParams(
            dimension_semantics=("arbitrary",)),   # layers are sequential
    )(x, edge_feat, src_oh, dst_oh, hsel,
      params["wq"], params["bq"], params["wkve"], params["bkve"],
      params["w1x"], params["b1x"], params["w2x"], params["b2x"],
      params["w1e"], params["b1e"], params["w2e"], params["b2e"],
      params["g1"], params["bn1"], params["g2"], params["bn2"],
      params["w_out"], params["b_out"])


# ------------------------------- parameter init -------------------------------- #

def init_params(key, input_dim, emb_dim, output_dim, num_layers):
    def lin(k, fan_in, fan_out):
        kw, kb = jax.random.split(k)
        bound = 1.0 / math.sqrt(fan_in)
        w = jax.random.uniform(kw, (fan_in, fan_out), jnp.float32, -bound, bound)
        b = jax.random.uniform(kb, (1, fan_out), jnp.float32, -bound, bound)
        return w, b

    names = ["wq", "bq", "wkve", "bkve", "w1x", "b1x", "w2x", "b2x",
             "w1e", "b1e", "w2e", "b2e", "g1", "bn1", "g2", "bn2"]
    stacks = {n: [] for n in names}
    for _ in range(num_layers):
        key, *ks = jax.random.split(key, 9)
        wq, bq = lin(ks[0], input_dim, input_dim)
        wk, bk = lin(ks[1], input_dim, input_dim)
        wv, bv = lin(ks[2], input_dim, input_dim)
        we, be = lin(ks[3], input_dim, input_dim)
        w1x, b1x = lin(ks[4], input_dim, emb_dim)
        w2x, b2x = lin(ks[5], emb_dim, input_dim)
        w1e, b1e = lin(ks[6], input_dim, emb_dim)
        w2e, b2e = lin(ks[7], emb_dim, input_dim)
        vals = dict(
            wq=wq, bq=bq,
            wkve=jnp.concatenate([wk, wv, we], axis=1),
            bkve=jnp.concatenate([bk, bv, be], axis=1),
            w1x=w1x, b1x=b1x, w2x=w2x, b2x=b2x,
            w1e=w1e, b1e=b1e, w2e=w2e, b2e=b2e,
            g1=jnp.ones((1, input_dim), jnp.float32),
            bn1=jnp.zeros((1, input_dim), jnp.float32),
            g2=jnp.ones((1, input_dim), jnp.float32),
            bn2=jnp.zeros((1, input_dim), jnp.float32),
        )
        for n in names:
            stacks[n].append(vals[n])

    params = {n: jnp.stack(v, axis=0) for n, v in stacks.items()}
    key, ko = jax.random.split(key)
    w_out, b_out = lin(ko, input_dim, output_dim)
    params["w_out"] = w_out
    params["b_out"] = b_out
    return params


# ------------------------------------ main -------------------------------------- #

if __name__ == "__main__":
    N, E = 8, 16                       # nodes, edges
    input_dim, emb_dim, output_dim = 32, 64, 16
    num_layers, num_heads = 2, 2

    key = jax.random.PRNGKey(0)
    kx, ke, kp = jax.random.split(key, 3)
    x = jax.random.normal(kx, (N, input_dim), jnp.float32)
    edge_feat = jax.random.normal(ke, (E, input_dim), jnp.float32)

    # deterministic edge list with unique (src, dst) pairs, no self-loops
    idx = jnp.arange(E)
    src = idx % N
    dst = (idx // N + idx + 1) % N
    edge_index = jnp.stack([src, dst]).astype(jnp.int32)      # [2, E]

    params = init_params(kp, input_dim, emb_dim, output_dim, num_layers)

    fwd = jax.jit(yate_encode, static_argnames="num_heads")
    out = fwd(params, x, edge_index, edge_feat, num_heads=num_heads)
    out = jax.block_until_ready(out)
    assert out.shape == (N, output_dim)
    print("KERNEL_OK")
</pallas_src>

<mosaic_0001>
module attributes {stable_mosaic.version = 11 : i64} {
  func.func @kernel(%arg0: i32, %arg1: memref<8x32xf32, #tpu.memory_space<vmem>>, %arg2: memref<16x32xf32, #tpu.memory_space<vmem>>, %arg3: memref<16x8xf32, #tpu.memory_space<vmem>>, %arg4: memref<16x8xf32, #tpu.memory_space<vmem>>, %arg5: memref<2x32xf32, #tpu.memory_space<vmem>>, %arg6: memref<1x32x32xf32, #tpu.memory_space<vmem>>, %arg7: memref<1x1x32xf32, #tpu.memory_space<vmem>>, %arg8: memref<1x32x96xf32, #tpu.memory_space<vmem>>, %arg9: memref<1x1x96xf32, #tpu.memory_space<vmem>>, %arg10: memref<1x32x64xf32, #tpu.memory_space<vmem>>, %arg11: memref<1x1x64xf32, #tpu.memory_space<vmem>>, %arg12: memref<1x64x32xf32, #tpu.memory_space<vmem>>, %arg13: memref<1x1x32xf32, #tpu.memory_space<vmem>>, %arg14: memref<1x32x64xf32, #tpu.memory_space<vmem>>, %arg15: memref<1x1x64xf32, #tpu.memory_space<vmem>>, %arg16: memref<1x64x32xf32, #tpu.memory_space<vmem>>, %arg17: memref<1x1x32xf32, #tpu.memory_space<vmem>>, %arg18: memref<1x1x32xf32, #tpu.memory_space<vmem>>, %arg19: memref<1x1x32xf32, #tpu.memory_space<vmem>>, %arg20: memref<1x1x32xf32, #tpu.memory_space<vmem>>, %arg21: memref<1x1x32xf32, #tpu.memory_space<vmem>>, %arg22: memref<32x16xf32, #tpu.memory_space<vmem>>, %arg23: memref<1x16xf32, #tpu.memory_space<vmem>>, %arg24: memref<8x16xf32, #tpu.memory_space<vmem>>, %arg25: memref<8x32xf32, #tpu.memory_space<vmem>>, %arg26: memref<16x32xf32, #tpu.memory_space<vmem>>) attributes {dimension_semantics = [#tpu.dimension_semantics<arbitrary>], iteration_bounds = array<i64: 2>, scalar_prefetch = 0 : i64, scratch_operands = 2 : i64, tpu.core_type = #tpu.core_type<tc>, window_params = [{pipeline_mode = #tpu.pipeline_mode<synchronous>, transform_indices = @transform_0, window_bounds = array<i64: 8, 32>}, {pipeline_mode = #tpu.pipeline_mode<synchronous>, transform_indices = @transform_1, window_bounds = array<i64: 16, 32>}, {pipeline_mode = #tpu.pipeline_mode<synchronous>, transform_indices = @transform_2, window_bounds = array<i64: 16, 8>}, {pipeline_mode = #tpu.pipeline_mode<synchronous>, transform_indices = @transform_3, window_bounds = array<i64: 16, 8>}, {pipeline_mode = #tpu.pipeline_mode<synchronous>, transform_indices = @transform_4, window_bounds = array<i64: 2, 32>}, {transform_indices = @transform_5, window_bounds = array<i64: 1, 32, 32>}, {transform_indices = @transform_6, window_bounds = array<i64: 1, 1, 32>}, {transform_indices = @transform_7, window_bounds = array<i64: 1, 32, 96>}, {transform_indices = @transform_8, window_bounds = array<i64: 1, 1, 96>}, {transform_indices = @transform_9, window_bounds = array<i64: 1, 32, 64>}, {transform_indices = @transform_10, window_bounds = array<i64: 1, 1, 64>}, {transform_indices = @transform_11, window_bounds = array<i64: 1, 64, 32>}, {transform_indices = @transform_12, window_bounds = array<i64: 1, 1, 32>}, {transform_indices = @transform_13, window_bounds = array<i64: 1, 32, 64>}, {transform_indices = @transform_14, window_bounds = array<i64: 1, 1, 64>}, {transform_indices = @transform_15, window_bounds = array<i64: 1, 64, 32>}, {transform_indices = @transform_16, window_bounds = array<i64: 1, 1, 32>}, {transform_indices = @transform_17, window_bounds = array<i64: 1, 1, 32>}, {transform_indices = @transform_18, window_bounds = array<i64: 1, 1, 32>}, {transform_indices = @transform_19, window_bounds = array<i64: 1, 1, 32>}, {transform_indices = @transform_20, window_bounds = array<i64: 1, 1, 32>}, {pipeline_mode = #tpu.pipeline_mode<synchronous>, transform_indices = @transform_21, window_bounds = array<i64: 32, 16>}, {pipeline_mode = #tpu.pipeline_mode<synchronous>, transform_indices = @transform_22, window_bounds = array<i64: 1, 16>}, {pipeline_mode = #tpu.pipeline_mode<synchronous>, transform_indices = @transform_23, window_bounds = array<i64: 8, 16>}]} {
    %c0_i32 = arith.constant 0 : i32
    %0 = arith.cmpi eq, %arg0, %c0_i32 : i32
    %1 = arith.extui %0 : i1 to i32
    %c0_i32_0 = arith.constant 0 : i32
    %2 = arith.cmpi ne, %1, %c0_i32_0 : i32
    scf.if %2 {
      %c0_113 = arith.constant 0 : index
      %c0_114 = arith.constant 0 : index
      %225 = vector.load %arg1[%c0_113, %c0_114] : memref<8x32xf32, #tpu.memory_space<vmem>>, vector<8x32xf32>
      %c0_115 = arith.constant 0 : index
      %c0_116 = arith.constant 0 : index
      %226 = vector.load %arg25[%c0_115, %c0_116] : memref<8x32xf32, #tpu.memory_space<vmem>>, vector<8x32xf32>
      tpu.vector_store %arg25[%c0_115, %c0_116], %225 {strides = array<i32>} : memref<8x32xf32, #tpu.memory_space<vmem>>, vector<8x32xf32>,
      %c0_117 = arith.constant 0 : index
      %c0_118 = arith.constant 0 : index
      %227 = vector.load %arg2[%c0_117, %c0_118] : memref<16x32xf32, #tpu.memory_space<vmem>>, vector<16x32xf32>
      %c0_119 = arith.constant 0 : index
      %c0_120 = arith.constant 0 : index
      %228 = vector.load %arg26[%c0_119, %c0_120] : memref<16x32xf32, #tpu.memory_space<vmem>>, vector<16x32xf32>
      tpu.vector_store %arg26[%c0_119, %c0_120], %227 {strides = array<i32>} : memref<16x32xf32, #tpu.memory_space<vmem>>, vector<16x32xf32>,
    } else {
    }
    %c0 = arith.constant 0 : index
    %c0_1 = arith.constant 0 : index
    %3 = vector.load %arg25[%c0, %c0_1] : memref<8x32xf32, #tpu.memory_space<vmem>>, vector<8x32xf32>
    %c0_2 = arith.constant 0 : index
    %c0_3 = arith.constant 0 : index
    %4 = vector.load %arg26[%c0_2, %c0_3] : memref<16x32xf32, #tpu.memory_space<vmem>>, vector<16x32xf32>
    %c0_4 = arith.constant 0 : index
    %c0_5 = arith.constant 0 : index
    %5 = vector.load %arg3[%c0_4, %c0_5] : memref<16x8xf32, #tpu.memory_space<vmem>>, vector<16x8xf32>
    %c0_6 = arith.constant 0 : index
    %c0_7 = arith.constant 0 : index
    %6 = vector.load %arg4[%c0_6, %c0_7] : memref<16x8xf32, #tpu.memory_space<vmem>>, vector<16x8xf32>
    %cst = arith.constant dense<0.000000e+00> : vector<16x32xf32>
    %7 = tpu.matmul %6, %3, %cst {dimension_numbers = #tpu.dot_dimension_numbers<[1], [0], [0], [1], [0, 0, 1, 1], [], []>} : vector<16x8xf32>, vector<8x32xf32>, vector<16x32xf32> -> vector<16x32xf32>
    %8 = arith.mulf %7, %4 : vector<16x32xf32>
    %c0_8 = arith.constant 0 : index
    %c0_9 = arith.constant 0 : index
    %c0_10 = arith.constant 0 : index
    %9 = vector.load %arg6[%c0_8, %c0_9, %c0_10] : memref<1x32x32xf32, #tpu.memory_space<vmem>>, vector<1x32x32xf32>
    %10 = vector.shape_cast %9 : vector<1x32x32xf32> to vector<32x32xf32>
    %cst_11 = arith.constant dense<0.000000e+00> : vector<8x32xf32>
    %11 = tpu.matmul %3, %10, %cst_11 {dimension_numbers = #tpu.dot_dimension_numbers<[1], [0], [0], [1], [0, 0, 1, 1], [], []>} : vector<8x32xf32>, vector<32x32xf32>, vector<8x32xf32> -> vector<8x32xf32>
    %c0_12 = arith.constant 0 : index
    %c0_13 = arith.constant 0 : index
    %c0_14 = arith.constant 0 : index
    %12 = vector.load %arg7[%c0_12, %c0_13, %c0_14] : memref<1x1x32xf32, #tpu.memory_space<vmem>>, vector<1x1x32xf32>
    %13 = vector.shape_cast %12 : vector<1x1x32xf32> to vector<1x32xf32>
    %14 = vector.broadcast %13 : vector<1x32xf32> to vector<8x32xf32>
    %15 = arith.addf %11, %14 : vector<8x32xf32>
    %c0_15 = arith.constant 0 : index
    %c0_16 = arith.constant 0 : index
    %c0_17 = arith.constant 0 : index
    %16 = vector.load %arg8[%c0_15, %c0_16, %c0_17] : memref<1x32x96xf32, #tpu.memory_space<vmem>>, vector<1x32x96xf32>
    %17 = vector.shape_cast %16 : vector<1x32x96xf32> to vector<32x96xf32>
    %cst_18 = arith.constant dense<0.000000e+00> : vector<16x96xf32>
    %18 = tpu.matmul %8, %17, %cst_18 {dimension_numbers = #tpu.dot_dimension_numbers<[1], [0], [0], [1], [0, 0, 1, 1], [], []>} : vector<16x32xf32>, vector<32x96xf32>, vector<16x96xf32> -> vector<16x96xf32>
    %c0_19 = arith.constant 0 : index
    %c0_20 = arith.constant 0 : index
    %c0_21 = arith.constant 0 : index
    %19 = vector.load %arg9[%c0_19, %c0_20, %c0_21] : memref<1x1x96xf32, #tpu.memory_space<vmem>>, vector<1x1x96xf32>
    %20 = vector.shape_cast %19 : vector<1x1x96xf32> to vector<1x96xf32>
    %21 = vector.broadcast %20 : vector<1x96xf32> to vector<16x96xf32>
    %22 = arith.addf %18, %21 : vector<16x96xf32>
    %23 = vector.extract_strided_slice %22 {offsets = [0, 0], sizes = [16, 32], strides = [1, 1]} : vector<16x96xf32> to vector<16x32xf32>
    %24 = vector.extract_strided_slice %22 {offsets = [0, 32], sizes = [16, 32], strides = [1, 1]} : vector<16x96xf32> to vector<16x32xf32>
    %25 = vector.extract_strided_slice %22 {offsets = [0, 64], sizes = [16, 32], strides = [1, 1]} : vector<16x96xf32> to vector<16x32xf32>
    %cst_22 = arith.constant dense<0.000000e+00> : vector<16x32xf32>
    %26 = tpu.matmul %5, %15, %cst_22 {dimension_numbers = #tpu.dot_dimension_numbers<[1], [0], [0], [1], [0, 0, 1, 1], [], []>} : vector<16x8xf32>, vector<8x32xf32>, vector<16x32xf32> -> vector<16x32xf32>
    %27 = arith.mulf %26, %23 : vector<16x32xf32>
    %cst_23 = arith.constant 0.000000e+00 : f32
    %28 = vector.broadcast %cst_23 : f32 to vector<16x32xf32>
    %c0_24 = arith.constant 0 : index
    %c0_25 = arith.constant 0 : index
    %29 = vector.load %arg5[%c0_24, %c0_25] : memref<2x32xf32, #tpu.memory_space<vmem>>, vector<1x32xf32>
    %30 = vector.broadcast %29 : vector<1x32xf32> to vector<16x32xf32>
    %31 = arith.mulf %27, %30 : vector<16x32xf32>
    %cst_26 = arith.constant dense<0.000000e+00> : vector<16xf32>
    %32 = vector.multi_reduction <add>, %31, %cst_26 [1] : vector<16x32xf32> to vector<16xf32>
    %33 = vector.shape_cast %32 : vector<16xf32> to vector<16x1xf32>
    %34 = vector.broadcast %33 : vector<16x1xf32> to vector<16x8xf32>
    %35 = arith.mulf %5, %34 : vector<16x8xf32>
    %cst_27 = arith.constant dense<0.000000e+00> : vector<8x8xf32>
    %36 = tpu.matmul %35, %6, %cst_27 {dimension_numbers = #tpu.dot_dimension_numbers<[0], [0], [1], [1], [0, 1, 1, 1], [], []>} : vector<16x8xf32>, vector<16x8xf32>, vector<8x8xf32> -> vector<8x8xf32>
    %cst_28 = arith.constant 2.500000e-01 : f32
    %37 = vector.broadcast %cst_28 : f32 to vector<8x8xf32>
    %38 = arith.mulf %36, %37 : vector<8x8xf32>
    %cst_29 = arith.constant 0.000000e+00 : f32
    %39 = vector.broadcast %cst_29 : f32 to vector<8x8xf32>
    %40 = arith.cmpf one, %38, %39 : vector<8x8xf32>
    %cst_30 = arith.constant -9.000000e+15 : f32
    %41 = vector.broadcast %cst_30 : f32 to vector<8x8xf32>
    %42 = arith.select %40, %38, %41 : vector<8x8xi1>, vector<8x8xf32>
    %cst_31 = arith.constant dense<0xFF800000> : vector<8xf32>
    %43 = vector.multi_reduction <maximumf>, %42, %cst_31 [1] : vector<8x8xf32> to vector<8xf32>
    %44 = vector.shape_cast %43 : vector<8xf32> to vector<8x1xf32>
    %45 = vector.broadcast %44 : vector<8x1xf32> to vector<8x8xf32>
    %46 = arith.subf %42, %45 : vector<8x8xf32>
    %47 = math.exp %46 : vector<8x8xf32>
    %cst_32 = arith.constant dense<0.000000e+00> : vector<8xf32>
    %48 = vector.multi_reduction <add>, %47, %cst_32 [1] : vector<8x8xf32> to vector<8xf32>
    %49 = vector.shape_cast %48 : vector<8xf32> to vector<8x1xf32>
    %50 = tpu.reciprocal %49 {approx = true} : vector<8x1xf32> -> vector<8x1xf32>
    %51 = vector.broadcast %50 : vector<8x1xf32> to vector<8x8xf32>
    %52 = arith.mulf %47, %51 : vector<8x8xf32>
    %cst_33 = arith.constant dense<0.000000e+00> : vector<16x8xf32>
    %53 = tpu.matmul %5, %52, %cst_33 {dimension_numbers = #tpu.dot_dimension_numbers<[1], [0], [0], [1], [0, 0, 1, 1], [], []>} : vector<16x8xf32>, vector<8x8xf32>, vector<16x8xf32> -> vector<16x8xf32>
    %54 = arith.mulf %53, %6 : vector<16x8xf32>
    %cst_34 = arith.constant dense<0.000000e+00> : vector<16xf32>
    %55 = vector.multi_reduction <add>, %54, %cst_34 [1] : vector<16x8xf32> to vector<16xf32>
    %56 = vector.shape_cast %55 : vector<16xf32> to vector<16x1xf32>
    %57 = vector.broadcast %56 : vector<16x1xf32> to vector<16x32xf32>
    %58 = vector.broadcast %29 : vector<1x32xf32> to vector<16x32xf32>
    %59 = arith.mulf %57, %58 : vector<16x32xf32>
    %60 = arith.mulf %59, %24 : vector<16x32xf32>
    %61 = arith.addf %28, %60 : vector<16x32xf32>
    %c1 = arith.constant 1 : index
    %c0_35 = arith.constant 0 : index
    %62 = vector.load %arg5[%c1, %c0_35] : memref<2x32xf32, #tpu.memory_space<vmem>>, vector<1x32xf32>
    %63 = vector.broadcast %62 : vector<1x32xf32> to vector<16x32xf32>
    %64 = arith.mulf %27, %63 : vector<16x32xf32>
    %cst_36 = arith.constant dense<0.000000e+00> : vector<16xf32>
    %65 = vector.multi_reduction <add>, %64, %cst_36 [1] : vector<16x32xf32> to vector<16xf32>
    %66 = vector.shape_cast %65 : vector<16xf32> to vector<16x1xf32>
    %67 = vector.broadcast %66 : vector<16x1xf32> to vector<16x8xf32>
    %68 = arith.mulf %5, %67 : vector<16x8xf32>
    %cst_37 = arith.constant dense<0.000000e+00> : vector<8x8xf32>
    %69 = tpu.matmul %68, %6, %cst_37 {dimension_numbers = #tpu.dot_dimension_numbers<[0], [0], [1], [1], [0, 1, 1, 1], [], []>} : vector<16x8xf32>, vector<16x8xf32>, vector<8x8xf32> -> vector<8x8xf32>
    %cst_38 = arith.constant 2.500000e-01 : f32
    %70 = vector.broadcast %cst_38 : f32 to vector<8x8xf32>
    %71 = arith.mulf %69, %70 : vector<8x8xf32>
    %cst_39 = arith.constant 0.000000e+00 : f32
    %72 = vector.broadcast %cst_39 : f32 to vector<8x8xf32>
    %73 = arith.cmpf one, %71, %72 : vector<8x8xf32>
    %cst_40 = arith.constant -9.000000e+15 : f32
    %74 = vector.broadcast %cst_40 : f32 to vector<8x8xf32>
    %75 = arith.select %73, %71, %74 : vector<8x8xi1>, vector<8x8xf32>
    %cst_41 = arith.constant dense<0xFF800000> : vector<8xf32>
    %76 = vector.multi_reduction <maximumf>, %75, %cst_41 [1] : vector<8x8xf32> to vector<8xf32>
    %77 = vector.shape_cast %76 : vector<8xf32> to vector<8x1xf32>
    %78 = vector.broadcast %77 : vector<8x1xf32> to vector<8x8xf32>
    %79 = arith.subf %75, %78 : vector<8x8xf32>
    %80 = math.exp %79 : vector<8x8xf32>
    %cst_42 = arith.constant dense<0.000000e+00> : vector<8xf32>
    %81 = vector.multi_reduction <add>, %80, %cst_42 [1] : vector<8x8xf32> to vector<8xf32>
    %82 = vector.shape_cast %81 : vector<8xf32> to vector<8x1xf32>
    %83 = tpu.reciprocal %82 {approx = true} : vector<8x1xf32> -> vector<8x1xf32>
    %84 = vector.broadcast %83 : vector<8x1xf32> to vector<8x8xf32>
    %85 = arith.mulf %80, %84 : vector<8x8xf32>
    %cst_43 = arith.constant dense<0.000000e+00> : vector<16x8xf32>
    %86 = tpu.matmul %5, %85, %cst_43 {dimension_numbers = #tpu.dot_dimension_numbers<[1], [0], [0], [1], [0, 0, 1, 1], [], []>} : vector<16x8xf32>, vector<8x8xf32>, vector<16x8xf32> -> vector<16x8xf32>
    %87 = arith.mulf %86, %6 : vector<16x8xf32>
    %cst_44 = arith.constant dense<0.000000e+00> : vector<16xf32>
    %88 = vector.multi_reduction <add>, %87, %cst_44 [1] : vector<16x8xf32> to vector<16xf32>
    %89 = vector.shape_cast %88 : vector<16xf32> to vector<16x1xf32>
    %90 = vector.broadcast %89 : vector<16x1xf32> to vector<16x32xf32>
    %91 = vector.broadcast %62 : vector<1x32xf32> to vector<16x32xf32>
    %92 = arith.mulf %90, %91 : vector<16x32xf32>
    %93 = arith.mulf %92, %24 : vector<16x32xf32>
    %94 = arith.addf %61, %93 : vector<16x32xf32>
    %cst_45 = arith.constant dense<0.000000e+00> : vector<8x32xf32>
    %95 = tpu.matmul %5, %94, %cst_45 {dimension_numbers = #tpu.dot_dimension_numbers<[0], [0], [1], [1], [0, 1, 1, 1], [], []>} : vector<16x8xf32>, vector<16x32xf32>, vector<8x32xf32> -> vector<8x32xf32>
    %c0_46 = arith.constant 0 : index
    %c0_47 = arith.constant 0 : index
    %c0_48 = arith.constant 0 : index
    %96 = vector.load %arg18[%c0_46, %c0_47, %c0_48] : memref<1x1x32xf32, #tpu.memory_space<vmem>>, vector<1x1x32xf32>
    %97 = vector.shape_cast %96 : vector<1x1x32xf32> to vector<1x32xf32>
    %c0_49 = arith.constant 0 : index
    %c0_50 = arith.constant 0 : index
    %c0_51 = arith.constant 0 : index
    %98 = vector.load %arg19[%c0_49, %c0_50, %c0_51] : memref<1x1x32xf32, #tpu.memory_space<vmem>>, vector<1x1x32xf32>
    %99 = vector.shape_cast %98 : vector<1x1x32xf32> to vector<1x32xf32>
    %100 = arith.addf %3, %95 : vector<8x32xf32>
    %cst_52 = arith.constant dense<0.000000e+00> : vector<8xf32>
    %101 = vector.multi_reduction <add>, %100, %cst_52 [1] : vector<8x32xf32> to vector<8xf32>
    %102 = vector.shape_cast %101 : vector<8xf32> to vector<8x1xf32>
    %cst_53 = arith.constant 3.125000e-02 : f32
    %103 = vector.broadcast %cst_53 : f32 to vector<8x1xf32>
    %104 = arith.mulf %102, %103 : vector<8x1xf32>
    %105 = vector.broadcast %104 : vector<8x1xf32> to vector<8x32xf32>
    %106 = arith.subf %100, %105 : vector<8x32xf32>
    %107 = arith.mulf %106, %106 : vector<8x32xf32>
    %cst_54 = arith.constant dense<0.000000e+00> : vector<8xf32>
    %108 = vector.multi_reduction <add>, %107, %cst_54 [1] : vector<8x32xf32> to vector<8xf32>
    %109 = vector.shape_cast %108 : vector<8xf32> to vector<8x1xf32>
    %cst_55 = arith.constant 3.125000e-02 : f32
    %110 = vector.broadcast %cst_55 : f32 to vector<8x1xf32>
    %111 = arith.mulf %109, %110 : vector<8x1xf32>
    %cst_56 = arith.constant 9.99999974E-6 : f32
    %112 = vector.broadcast %cst_56 : f32 to vector<8x1xf32>
    %113 = arith.addf %111, %112 : vector<8x1xf32>
    %114 = math.rsqrt %113 : vector<8x1xf32>
    %115 = vector.broadcast %114 : vector<8x1xf32> to vector<8x32xf32>
    %116 = arith.mulf %106, %115 : vector<8x32xf32>
    %117 = vector.broadcast %97 : vector<1x32xf32> to vector<8x32xf32>
    %118 = arith.mulf %116, %117 : vector<8x32xf32>
    %119 = vector.broadcast %99 : vector<1x32xf32> to vector<8x32xf32>
    %120 = arith.addf %118, %119 : vector<8x32xf32>
    %121 = arith.addf %4, %25 : vector<16x32xf32>
    %cst_57 = arith.constant dense<0.000000e+00> : vector<16xf32>
    %122 = vector.multi_reduction <add>, %121, %cst_57 [1] : vector<16x32xf32> to vector<16xf32>
    %123 = vector.shape_cast %122 : vector<16xf32> to vector<16x1xf32>
    %cst_58 = arith.constant 3.125000e-02 : f32
    %124 = vector.broadcast %cst_58 : f32 to vector<16x1xf32>
    %125 = arith.mulf %123, %124 : vector<16x1xf32>
    %126 = vector.broadcast %125 : vector<16x1xf32> to vector<16x32xf32>
    %127 = arith.subf %121, %126 : vector<16x32xf32>
    %128 = arith.mulf %127, %127 : vector<16x32xf32>
    %cst_59 = arith.constant dense<0.000000e+00> : vector<16xf32>
    %129 = vector.multi_reduction <add>, %128, %cst_59 [1] : vector<16x32xf32> to vector<16xf32>
    %130 = vector.shape_cast %129 : vector<16xf32> to vector<16x1xf32>
    %cst_60 = arith.constant 3.125000e-02 : f32
    %131 = vector.broadcast %cst_60 : f32 to vector<16x1xf32>
    %132 = arith.mulf %130, %131 : vector<16x1xf32>
    %cst_61 = arith.constant 9.99999974E-6 : f32
    %133 = vector.broadcast %cst_61 : f32 to vector<16x1xf32>
    %134 = arith.addf %132, %133 : vector<16x1xf32>
    %135 = math.rsqrt %134 : vector<16x1xf32>
    %136 = vector.broadcast %135 : vector<16x1xf32> to vector<16x32xf32>
    %137 = arith.mulf %127, %136 : vector<16x32xf32>
    %138 = vector.broadcast %97 : vector<1x32xf32> to vector<16x32xf32>
    %139 = arith.mulf %137, %138 : vector<16x32xf32>
    %140 = vector.broadcast %99 : vector<1x32xf32> to vector<16x32xf32>
    %141 = arith.addf %139, %140 : vector<16x32xf32>
    %c0_62 = arith.constant 0 : index
    %c0_63 = arith.constant 0 : index
    %c0_64 = arith.constant 0 : index
    %142 = vector.load %arg20[%c0_62, %c0_63, %c0_64] : memref<1x1x32xf32, #tpu.memory_space<vmem>>, vector<1x1x32xf32>
    %143 = vector.shape_cast %142 : vector<1x1x32xf32> to vector<1x32xf32>
    %c0_65 = arith.constant 0 : index
    %c0_66 = arith.constant 0 : index
    %c0_67 = arith.constant 0 : index
    %144 = vector.load %arg21[%c0_65, %c0_66, %c0_67] : memref<1x1x32xf32, #tpu.memory_space<vmem>>, vector<1x1x32xf32>
    %145 = vector.shape_cast %144 : vector<1x1x32xf32> to vector<1x32xf32>
    %c0_68 = arith.constant 0 : index
    %c0_69 = arith.constant 0 : index
    %c0_70 = arith.constant 0 : index
    %146 = vector.load %arg10[%c0_68, %c0_69, %c0_70] : memref<1x32x64xf32, #tpu.memory_space<vmem>>, vector<1x32x64xf32>
    %147 = vector.shape_cast %146 : vector<1x32x64xf32> to vector<32x64xf32>
    %cst_71 = arith.constant dense<0.000000e+00> : vector<8x64xf32>
    %148 = tpu.matmul %120, %147, %cst_71 {dimension_numbers = #tpu.dot_dimension_numbers<[1], [0], [0], [1], [0, 0, 1, 1], [], []>} : vector<8x32xf32>, vector<32x64xf32>, vector<8x64xf32> -> vector<8x64xf32>
    %c0_72 = arith.constant 0 : index
    %c0_73 = arith.constant 0 : index
    %c0_74 = arith.constant 0 : index
    %149 = vector.load %arg11[%c0_72, %c0_73, %c0_74] : memref<1x1x64xf32, #tpu.memory_space<vmem>>, vector<1x1x64xf32>
    %150 = vector.shape_cast %149 : vector<1x1x64xf32> to vector<1x64xf32>
    %151 = vector.broadcast %150 : vector<1x64xf32> to vector<8x64xf32>
    %152 = arith.addf %148, %151 : vector<8x64xf32>
    %cst_75 = arith.constant 0.000000e+00 : f32
    %153 = vector.broadcast %cst_75 : f32 to vector<8x64xf32>
    %154 = arith.maximumf %152, %153 : vector<8x64xf32>
    %c0_76 = arith.constant 0 : index
    %c0_77 = arith.constant 0 : index
    %c0_78 = arith.constant 0 : index
    %155 = vector.load %arg12[%c0_76, %c0_77, %c0_78] : memref<1x64x32xf32, #tpu.memory_space<vmem>>, vector<1x64x32xf32>
    %156 = vector.shape_cast %155 : vector<1x64x32xf32> to vector<64x32xf32>
    %cst_79 = arith.constant dense<0.000000e+00> : vector<8x32xf32>
    %157 = tpu.matmul %154, %156, %cst_79 {dimension_numbers = #tpu.dot_dimension_numbers<[1], [0], [0], [1], [0, 0, 1, 1], [], []>} : vector<8x64xf32>, vector<64x32xf32>, vector<8x32xf32> -> vector<8x32xf32>
    %c0_80 = arith.constant 0 : index
    %c0_81 = arith.constant 0 : index
    %c0_82 = arith.constant 0 : index
    %158 = vector.load %arg13[%c0_80, %c0_81, %c0_82] : memref<1x1x32xf32, #tpu.memory_space<vmem>>, vector<1x1x32xf32>
    %159 = vector.shape_cast %158 : vector<1x1x32xf32> to vector<1x32xf32>
    %160 = vector.broadcast %159 : vector<1x32xf32> to vector<8x32xf32>
    %161 = arith.addf %157, %160 : vector<8x32xf32>
    %162 = arith.addf %120, %161 : vector<8x32xf32>
    %cst_83 = arith.constant dense<0.000000e+00> : vector<8xf32>
    %163 = vector.multi_reduction <add>, %162, %cst_83 [1] : vector<8x32xf32> to vector<8xf32>
    %164 = vector.shape_cast %163 : vector<8xf32> to vector<8x1xf32>
    %cst_84 = arith.constant 3.125000e-02 : f32
    %165 = vector.broadcast %cst_84 : f32 to vector<8x1xf32>
    %166 = arith.mulf %164, %165 : vector<8x1xf32>
    %167 = vector.broadcast %166 : vector<8x1xf32> to vector<8x32xf32>
    %168 = arith.subf %162, %167 : vector<8x32xf32>
    %169 = arith.mulf %168, %168 : vector<8x32xf32>
    %cst_85 = arith.constant dense<0.000000e+00> : vector<8xf32>
    %170 = vector.multi_reduction <add>, %169, %cst_85 [1] : vector<8x32xf32> to vector<8xf32>
    %171 = vector.shape_cast %170 : vector<8xf32> to vector<8x1xf32>
    %cst_86 = arith.constant 3.125000e-02 : f32
    %172 = vector.broadcast %cst_86 : f32 to vector<8x1xf32>
    %173 = arith.mulf %171, %172 : vector<8x1xf32>
    %cst_87 = arith.constant 9.99999974E-6 : f32
    %174 = vector.broadcast %cst_87 : f32 to vector<8x1xf32>
    %175 = arith.addf %173, %174 : vector<8x1xf32>
    %176 = math.rsqrt %175 : vector<8x1xf32>
    %177 = vector.broadcast %176 : vector<8x1xf32> to vector<8x32xf32>
    %178 = arith.mulf %168, %177 : vector<8x32xf32>
    %179 = vector.broadcast %143 : vector<1x32xf32> to vector<8x32xf32>
    %180 = arith.mulf %178, %179 : vector<8x32xf32>
    %181 = vector.broadcast %145 : vector<1x32xf32> to vector<8x32xf32>
    %182 = arith.addf %180, %181 : vector<8x32xf32>
    %c0_88 = arith.constant 0 : index
    %c0_89 = arith.constant 0 : index
    %c0_90 = arith.constant 0 : index
    %183 = vector.load %arg14[%c0_88, %c0_89, %c0_90] : memref<1x32x64xf32, #tpu.memory_space<vmem>>, vector<1x32x64xf32>
    %184 = vector.shape_cast %183 : vector<1x32x64xf32> to vector<32x64xf32>
    %cst_91 = arith.constant dense<0.000000e+00> : vector<16x64xf32>
    %185 = tpu.matmul %141, %184, %cst_91 {dimension_numbers = #tpu.dot_dimension_numbers<[1], [0], [0], [1], [0, 0, 1, 1], [], []>} : vector<16x32xf32>, vector<32x64xf32>, vector<16x64xf32> -> vector<16x64xf32>
    %c0_92 = arith.constant 0 : index
    %c0_93 = arith.constant 0 : index
    %c0_94 = arith.constant 0 : index
    %186 = vector.load %arg15[%c0_92, %c0_93, %c0_94] : memref<1x1x64xf32, #tpu.memory_space<vmem>>, vector<1x1x64xf32>
    %187 = vector.shape_cast %186 : vector<1x1x64xf32> to vector<1x64xf32>
    %188 = vector.broadcast %187 : vector<1x64xf32> to vector<16x64xf32>
    %189 = arith.addf %185, %188 : vector<16x64xf32>
    %cst_95 = arith.constant 0.000000e+00 : f32
    %190 = vector.broadcast %cst_95 : f32 to vector<16x64xf32>
    %191 = arith.maximumf %189, %190 : vector<16x64xf32>
    %c0_96 = arith.constant 0 : index
    %c0_97 = arith.constant 0 : index
    %c0_98 = arith.constant 0 : index
    %192 = vector.load %arg16[%c0_96, %c0_97, %c0_98] : memref<1x64x32xf32, #tpu.memory_space<vmem>>, vector<1x64x32xf32>
    %193 = vector.shape_cast %192 : vector<1x64x32xf32> to vector<64x32xf32>
    %cst_99 = arith.constant dense<0.000000e+00> : vector<16x32xf32>
    %194 = tpu.matmul %191, %193, %cst_99 {dimension_numbers = #tpu.dot_dimension_numbers<[1], [0], [0], [1], [0, 0, 1, 1], [], []>} : vector<16x64xf32>, vector<64x32xf32>, vector<16x32xf32> -> vector<16x32xf32>
    %c0_100 = arith.constant 0 : index
    %c0_101 = arith.constant 0 : index
    %c0_102 = arith.constant 0 : index
    %195 = vector.load %arg17[%c0_100, %c0_101, %c0_102] : memref<1x1x32xf32, #tpu.memory_space<vmem>>, vector<1x1x32xf32>
    %196 = vector.shape_cast %195 : vector<1x1x32xf32> to vector<1x32xf32>
    %197 = vector.broadcast %196 : vector<1x32xf32> to vector<16x32xf32>
    %198 = arith.addf %194, %197 : vector<16x32xf32>
    %199 = arith.addf %141, %198 : vector<16x32xf32>
    %cst_103 = arith.constant dense<0.000000e+00> : vector<16xf32>
    %200 = vector.multi_reduction <add>, %199, %cst_103 [1] : vector<16x32xf32> to vector<16xf32>
    %201 = vector.shape_cast %200 : vector<16xf32> to vector<16x1xf32>
    %cst_104 = arith.constant 3.125000e-02 : f32
    %202 = vector.broadcast %cst_104 : f32 to vector<16x1xf32>
    %203 = arith.mulf %201, %202 : vector<16x1xf32>
    %204 = vector.broadcast %203 : vector<16x1xf32> to vector<16x32xf32>
    %205 = arith.subf %199, %204 : vector<16x32xf32>
    %206 = arith.mulf %205, %205 : vector<16x32xf32>
    %cst_105 = arith.constant dense<0.000000e+00> : vector<16xf32>
    %207 = vector.multi_reduction <add>, %206, %cst_105 [1] : vector<16x32xf32> to vector<16xf32>
    %208 = vector.shape_cast %207 : vector<16xf32> to vector<16x1xf32>
    %cst_106 = arith.constant 3.125000e-02 : f32
    %209 = vector.broadcast %cst_106 : f32 to vector<16x1xf32>
    %210 = arith.mulf %208, %209 : vector<16x1xf32>
    %cst_107 = arith.constant 9.99999974E-6 : f32
    %211 = vector.broadcast %cst_107 : f32 to vector<16x1xf32>
    %212 = arith.addf %210, %211 : vector<16x1xf32>
    %213 = math.rsqrt %212 : vector<16x1xf32>
    %214 = vector.broadcast %213 : vector<16x1xf32> to vector<16x32xf32>
    %215 = arith.mulf %205, %214 : vector<16x32xf32>
    %216 = vector.broadcast %143 : vector<1x32xf32> to vector<16x32xf32>
    %217 = arith.mulf %215, %216 : vector<16x32xf32>
    %218 = vector.broadcast %145 : vector<1x32xf32> to vector<16x32xf32>
    %219 = arith.addf %217, %218 : vector<16x32xf32>
    %c0_108 = arith.constant 0 : index
    %c0_109 = arith.constant 0 : index
    %220 = vector.load %arg25[%c0_108, %c0_109] : memref<8x32xf32, #tpu.memory_space<vmem>>, vector<8x32xf32>
    tpu.vector_store %arg25[%c0_108, %c0_109], %182 {strides = array<i32>} : memref<8x32xf32, #tpu.memory_space<vmem>>, vector<8x32xf32>,
    %c0_110 = arith.constant 0 : index
    %c0_111 = arith.constant 0 : index
    %221 = vector.load %arg26[%c0_110, %c0_111] : memref<16x32xf32, #tpu.memory_space<vmem>>, vector<16x32xf32>
    tpu.vector_store %arg26[%c0_110, %c0_111], %219 {strides = array<i32>} : memref<16x32xf32, #tpu.memory_space<vmem>>, vector<16x32xf32>,
    %c1_i32 = arith.constant 1 : i32
    %222 = arith.cmpi eq, %arg0, %c1_i32 : i32
    %223 = arith.extui %222 : i1 to i32
    %c0_i32_112 = arith.constant 0 : i32
    %224 = arith.cmpi ne, %223, %c0_i32_112 : i32
    scf.if %224 {
      %c0_113 = arith.constant 0 : index
      %c0_114 = arith.constant 0 : index
      %225 = vector.load %arg22[%c0_113, %c0_114] : memref<32x16xf32, #tpu.memory_space<vmem>>, vector<32x16xf32>
      %cst_115 = arith.constant dense<0.000000e+00> : vector<8x16xf32>
      %226 = tpu.matmul %182, %225, %cst_115 {dimension_numbers = #tpu.dot_dimension_numbers<[1], [0], [0], [1], [0, 0, 1, 1], [], []>} : vector<8x32xf32>, vector<32x16xf32>, vector<8x16xf32> -> vector<8x16xf32>
      %c0_116 = arith.constant 0 : index
      %c0_117 = arith.constant 0 : index
      %227 = vector.load %arg23[%c0_116, %c0_117] : memref<1x16xf32, #tpu.memory_space<vmem>>, vector<1x16xf32>
      %228 = vector.broadcast %227 : vector<1x16xf32> to vector<8x16xf32>
      %229 = arith.addf %226, %228 : vector<8x16xf32>
      %c0_118 = arith.constant 0 : index
      %c0_119 = arith.constant 0 : index
      %230 = vector.load %arg24[%c0_118, %c0_119] : memref<8x16xf32, #tpu.memory_space<vmem>>, vector<8x16xf32>
      tpu.vector_store %arg24[%c0_118, %c0_119], %229 {strides = array<i32>} : memref<8x16xf32, #tpu.memory_space<vmem>>, vector<8x16xf32>,
    } else {
    }
    return
  }
  func.func @transform_0(%arg0: i32) -> (i32, i32) {
    %c0_i32 = arith.constant 0 : i32
    %c0_i32_0 = arith.constant 0 : i32
    %c0_i32_1 = arith.constant 0 : i32
    return %c0_i32, %c0_i32_0 : i32, i32
  }
  func.func @transform_1(%arg0: i32) -> (i32, i32) {
    %c0_i32 = arith.constant 0 : i32
    %c0_i32_0 = arith.constant 0 : i32
    %c0_i32_1 = arith.constant 0 : i32
    return %c0_i32, %c0_i32_0 : i32, i32
  }
  func.func @transform_2(%arg0: i32) -> (i32, i32) {
    %c0_i32 = arith.constant 0 : i32
    %c0_i32_0 = arith.constant 0 : i32
    %c0_i32_1 = arith.constant 0 : i32
    return %c0_i32, %c0_i32_0 : i32, i32
  }
  func.func @transform_3(%arg0: i32) -> (i32, i32) {
    %c0_i32 = arith.constant 0 : i32
    %c0_i32_0 = arith.constant 0 : i32
    %c0_i32_1 = arith.constant 0 : i32
    return %c0_i32, %c0_i32_0 : i32, i32
  }
  func.func @transform_4(%arg0: i32) -> (i32, i32) {
    %c0_i32 = arith.constant 0 : i32
    %c0_i32_0 = arith.constant 0 : i32
    %c0_i32_1 = arith.constant 0 : i32
    return %c0_i32, %c0_i32_0 : i32, i32
  }
  func.func @transform_5(%arg0: i32) -> (i32, i32, i32) {
    %c0_i32 = arith.constant 0 : i32
    %c0_i32_0 = arith.constant 0 : i32
    %c0_i32_1 = arith.constant 0 : i32
    return %arg0, %c0_i32, %c0_i32_0 : i32, i32, i32
  }
  func.func @transform_6(%arg0: i32) -> (i32, i32, i32) {
    %c0_i32 = arith.constant 0 : i32
    %c0_i32_0 = arith.constant 0 : i32
    %c0_i32_1 = arith.constant 0 : i32
    return %arg0, %c0_i32, %c0_i32_0 : i32, i32, i32
  }
  func.func @transform_7(%arg0: i32) -> (i32, i32, i32) {
    %c0_i32 = arith.constant 0 : i32
    %c0_i32_0 = arith.constant 0 : i32
    %c0_i32_1 = arith.constant 0 : i32
    return %arg0, %c0_i32, %c0_i32_0 : i32, i32, i32
  }
  func.func @transform_8(%arg0: i32) -> (i32, i32, i32) {
    %c0_i32 = arith.constant 0 : i32
    %c0_i32_0 = arith.constant 0 : i32
    %c0_i32_1 = arith.constant 0 : i32
    return %arg0, %c0_i32, %c0_i32_0 : i32, i32, i32
  }
  func.func @transform_9(%arg0: i32) -> (i32, i32, i32) {
    %c0_i32 = arith.constant 0 : i32
    %c0_i32_0 = arith.constant 0 : i32
    %c0_i32_1 = arith.constant 0 : i32
    return %arg0, %c0_i32, %c0_i32_0 : i32, i32, i32
  }
  func.func @transform_10(%arg0: i32) -> (i32, i32, i32) {
    %c0_i32 = arith.constant 0 : i32
    %c0_i32_0 = arith.constant 0 : i32
    %c0_i32_1 = arith.constant 0 : i32
    return %arg0, %c0_i32, %c0_i32_0 : i32, i32, i32
  }
  func.func @transform_11(%arg0: i32) -> (i32, i32, i32) {
    %c0_i32 = arith.constant 0 : i32
    %c0_i32_0 = arith.constant 0 : i32
    %c0_i32_1 = arith.constant 0 : i32
    return %arg0, %c0_i32, %c0_i32_0 : i32, i32, i32
  }
  func.func @transform_12(%arg0: i32) -> (i32, i32, i32) {
    %c0_i32 = arith.constant 0 : i32
    %c0_i32_0 = arith.constant 0 : i32
    %c0_i32_1 = arith.constant 0 : i32
    return %arg0, %c0_i32, %c0_i32_0 : i32, i32, i32
  }
  func.func @transform_13(%arg0: i32) -> (i32, i32, i32) {
    %c0_i32 = arith.constant 0 : i32
    %c0_i32_0 = arith.constant 0 : i32
    %c0_i32_1 = arith.constant 0 : i32
    return %arg0, %c0_i32, %c0_i32_0 : i32, i32, i32
  }
  func.func @transform_14(%arg0: i32) -> (i32, i32, i32) {
    %c0_i32 = arith.constant 0 : i32
    %c0_i32_0 = arith.constant 0 : i32
    %c0_i32_1 = arith.constant 0 : i32
    return %arg0, %c0_i32, %c0_i32_0 : i32, i32, i32
  }
  func.func @transform_15(%arg0: i32) -> (i32, i32, i32) {
    %c0_i32 = arith.constant 0 : i32
    %c0_i32_0 = arith.constant 0 : i32
    %c0_i32_1 = arith.constant 0 : i32
    return %arg0, %c0_i32, %c0_i32_0 : i32, i32, i32
  }
  func.func @transform_16(%arg0: i32) -> (i32, i32, i32) {
    %c0_i32 = arith.constant 0 : i32
    %c0_i32_0 = arith.constant 0 : i32
    %c0_i32_1 = arith.constant 0 : i32
    return %arg0, %c0_i32, %c0_i32_0 : i32, i32, i32
  }
  func.func @transform_17(%arg0: i32) -> (i32, i32, i32) {
    %c0_i32 = arith.constant 0 : i32
    %c0_i32_0 = arith.constant 0 : i32
    %c0_i32_1 = arith.constant 0 : i32
    return %arg0, %c0_i32, %c0_i32_0 : i32, i32, i32
  }
  func.func @transform_18(%arg0: i32) -> (i32, i32, i32) {
    %c0_i32 = arith.constant 0 : i32
    %c0_i32_0 = arith.constant 0 : i32
    %c0_i32_1 = arith.constant 0 : i32
    return %arg0, %c0_i32, %c0_i32_0 : i32, i32, i32
  }
  func.func @transform_19(%arg0: i32) -> (i32, i32, i32) {
    %c0_i32 = arith.constant 0 : i32
    %c0_i32_0 = arith.constant 0 : i32
    %c0_i32_1 = arith.constant 0 : i32
    return %arg0, %c0_i32, %c0_i32_0 : i32, i32, i32
  }
  func.func @transform_20(%arg0: i32) -> (i32, i32, i32) {
    %c0_i32 = arith.constant 0 : i32
    %c0_i32_0 = arith.constant 0 : i32
    %c0_i32_1 = arith.constant 0 : i32
    return %arg0, %c0_i32, %c0_i32_0 : i32, i32, i32
  }
  func.func @transform_21(%arg0: i32) -> (i32, i32) {
    %c0_i32 = arith.constant 0 : i32
    %c0_i32_0 = arith.constant 0 : i32
    %c0_i32_1 = arith.constant 0 : i32
    return %c0_i32, %c0_i32_0 : i32, i32
  }
  func.func @transform_22(%arg0: i32) -> (i32, i32) {
    %c0_i32 = arith.constant 0 : i32
    %c0_i32_0 = arith.constant 0 : i32
    %c0_i32_1 = arith.constant 0 : i32
    return %c0_i32, %c0_i32_0 : i32, i32
  }
  func.func @transform_23(%arg0: i32) -> (i32, i32) {
    %c0_i32 = arith.constant 0 : i32
    %c0_i32_0 = arith.constant 0 : i32
    %c0_i32_1 = arith.constant 0 : i32
    return %c0_i32, %c0_i32_0 : i32, i32
  }
}

</mosaic_0001>

<bundles_post_ra>
// kernel: yate_encode.1
= control target key start
LH: loop header
LB: loop body
LE: loop exit
PB: predicated region body
PF: predicated region fallthrough
CT: control target
= control target key end

     0   :  { %s3500_s0 = inlined_call_operand.vmem [shape: f32[8,32], index: 0, kind: input, shape index: {}]   ;;  %s3501_s1 = inlined_call_operand.vmem [shape: f32[16,32], index: 1, kind: input, shape index: {}]   ;;  %s3502_s2 = inlined_call_operand.vmem [shape: f32[16,8], index: 2, kind: input, shape index: {}]   ;;  %s3503_s3 = inlined_call_operand.vmem [shape: f32[16,8], index: 3, kind: input, shape index: {}]   ;;  %s3504_s4 = inlined_call_operand.vmem [shape: f32[2,32], index: 4, kind: input, shape index: {}]   ;;  %s3505_s5 = inlined_call_operand.vmem [shape: f32[2,32,32], index: 5, kind: input, shape index: {}]   ;;  %s3506_s6 = inlined_call_operand.vmem [shape: f32[2,1,32], index: 6, kind: input, shape index: {}]   ;;  %s3507_s7 = inlined_call_operand.vmem [shape: f32[2,32,96], index: 7, kind: input, shape index: {}]   ;;  %s3508_s8 = inlined_call_operand.vmem [shape: f32[2,1,96], index: 8, kind: input, shape index: {}]   ;;  %s3509_s9 = inlined_call_operand.vmem [shape: f32[2,32,64], index: 9, kind: input, shape index: {}]   ;;  %s3510_s10 = inlined_call_operand.vmem [shape: f32[2,1,64], index: 10, kind: input, shape index: {}]   ;;  %s3511_s11 = inlined_call_operand.vmem [shape: f32[2,64,32], index: 11, kind: input, shape index: {}]   ;;  %s3512_s12 = inlined_call_operand.vmem [shape: f32[2,1,32], index: 12, kind: input, shape index: {}]   ;;  %s3513_s13 = inlined_call_operand.vmem [shape: f32[2,32,64], index: 13, kind: input, shape index: {}]   ;;  %s3514_s14 = inlined_call_operand.vmem [shape: f32[2,1,64], index: 14, kind: input, shape index: {}]   ;;  %s3515_s15 = inlined_call_operand.vmem [shape: f32[2,64,32], index: 15, kind: input, shape index: {}]   ;;  %s3516_s16 = inlined_call_operand.vmem [shape: f32[2,1,32], index: 16, kind: input, shape index: {}]   ;;  %s3517_s17 = inlined_call_operand.vmem [shape: f32[2,1,32], index: 17, kind: input, shape index: {}]   ;;  %s3518_s18 = inlined_call_operand.vmem [shape: f32[2,1,32], index: 18, kind: input, shape index: {}]   ;;  %s3519_s19 = inlined_call_operand.vmem [shape: f32[2,1,32], index: 19, kind: input, shape index: {}]   ;;  %s3520_s20 = inlined_call_operand.vmem [shape: f32[2,1,32], index: 20, kind: input, shape index: {}]   ;;  %s3521_s21 = inlined_call_operand.vmem [shape: f32[32,16], index: 21, kind: input, shape index: {}]   ;;  %s3522_s22 = inlined_call_operand.vmem [shape: f32[1,16], index: 22, kind: input, shape index: {}]   ;;  %s3523_s23 = inlined_call_operand.hbm [shape: f32[8,16], index: 23, kind: output, shape index: {}]  }
   0x1   :  { %3532 = sst [smem:[#allocation9_spill]] %s3500_s0 }
   0x2   :  { %3533 = sst [smem:[#allocation10_spill]] %s3501_s1 }
   0x3   :  { %3534 = sst [smem:[#allocation11_spill]] %s3502_s2 }
   0x4   :  { %3535 = sst [smem:[#allocation12_spill]] %s3503_s3 }
   0x5   :  { %3536 = sst [smem:[#allocation13_spill]] %s3504_s4 }
   0x6   :  { %3537 = sst [smem:[#allocation14_spill]] %s3505_s5 }
   0x7   :  { %3538 = sst [smem:[#allocation15_spill]] %s3506_s6 }
   0x8   :  { %3539 = sst [smem:[#allocation16_spill]] %s3507_s7 }
   0x9   :  { %3540 = sst [smem:[#allocation17_spill]] %s3509_s9 }
   0xa   :  { %3541 = sst [smem:[#allocation18_spill]] %s3510_s10 }
   0xb   :  { %3542 = sst [smem:[#allocation19_spill]] %s3511_s11 }
   0xc   :  { %3543 = sst [smem:[#allocation20_spill]] %s3513_s13 }
   0xd   :  { %3544 = sst [smem:[#allocation21_spill]] %s3515_s15 }
   0xe   :  { %3545 = sst [smem:[#allocation22_spill]] %s3520_s20 }
   0xf   :  { %3546 = sst [smem:[#allocation23_spill]] %s3521_s21 }
  0x10   :  { %3547 = sst [smem:[#allocation24_spill]] %s3522_s22 }
  0x11   :  { %3548 = sst [smem:[#allocation25_spill]] %s3523_s23 }
  0x12   :  { %28 = vsyncpa [#allocation5], 0  ;;  %s3108_s4 = smov 0  }
  0x13 LB: > { %3549 = sst [smem:[#allocation7_spill]] %s2979_s4  ;;  %s3114_s30 = sadd.s32 4294967295, %s2979_s4   ;;  %s2979_s4 = sphi %s3108_s4, %s34_s4  }
  0x14   : > { %3550 = sst [smem:[#allocation8_spill]] %s3114_s30  ;;  %p2644_p0 = scmp.ge.s32.totalorder %s2979_s4, 1 }
  0x15   : > { %p763_p1 = scmp.lt.s32.totalorder %s2979_s4, 3 }
  0x17   : > { %p764_p2 = pnand %p2644_p0, %p763_p1 }
  0x18   : > { %p877_p3 = scmp.lt.s32.totalorder (!%p764_p2), %s3114_s30, 1  ;;  %s3552_s7 = sld [smem:[#allocation14_spill]] (!%p764_p2) }
  0x19   : > { %767 = sbr.rel (%p764_p2) target bundleno = 3075 (0xc03), region = 112  ;;  %s3553_s0 = sld [smem:[#allocation16_spill]] (!%p764_p2) }
  0x1a   : > { %s3554_s9 = sld [smem:[#allocation17_spill]] (!%p764_p2) }
  0x1b   : > { %s3556_s11 = sld [smem:[#allocation19_spill]] (!%p764_p2) }
  0x1c   : > { %s3557_s13 = sld [smem:[#allocation20_spill]] (!%p764_p2) }
  0x1d   : > { %s3558_s15 = sld [smem:[#allocation21_spill]] (!%p764_p2) }
  0x1e   : > { %s3120_s24 = scalar_select %p877_p3, %s3114_s30, 1 }
  0x20   : > { %s2697_s25 = sshll.u32 %s3120_s24, 5  ;;  %s2700_s27 = sshll.u32 %s3120_s24, 6 }
  0x21   : > { %s3130_s28 = scalar_lea.vmem %s3552_s7, %s2697_s25  ;;  %s3135_s4 = scalar_lea.vmem %s3553_s0, %s2697_s25 }
  0x22   : > { %s3144_s5 = scalar_lea.vmem %s3554_s9, %s2697_s25  ;;  %s3154_s29 = scalar_lea.vmem %s3556_s11, %s2700_s27 }
  0x23   : > { %s3163_s20 = scalar_lea.vmem %s3557_s13, %s2697_s25  ;;  %s3172_s10 = scalar_lea.vmem %s3558_s15, %s2700_s27 }
  0x24   : > { %s927_s22 = scalar_lea.vmem %s3517_s17, %s3120_s24  ;;  %s933_s30 = scalar_lea.vmem %s3519_s19, %s3120_s24 }
  0x25   : > { %s3559_s27 = sld [smem:[#allocation22_spill]] }
  0x26   : > { %s3560_s15 = sld [smem:[#allocation8_spill]] }
  0x2b   : > { %s936_s26 = scalar_lea.vmem %s3559_s27, %s3120_s24 }
  0x2c   : > { %p2657_p4 = scmp.ne.s32.totalorder %s3560_s15, 0 }
  0x2d   : > { %s3561_s11 = sld [smem:[#allocation9_spill]] (!%p2657_p4) }
  0x2e   : > { %940 = sbr.rel (%p2657_p4) target bundleno = 54 (0x36), region = 116  ;;  %s3562_s21 = sld [smem:[#allocation10_spill]] (!%p2657_p4) }
  0x33   : > { %v941_v0 = vld [vmem:[%s3561_s11] sm:$0xff]  ;;  %vm942_vm0 = vcmask 261120  }
  0x34   : > { %v944_v1 = vld [vmem:[%s3562_s21] sm:$0xff]  ;;  %v945_v2 = vld [vmem:[%s3562_s21 + $0x8] sm:$0xff]  ;;  %943 = vst.msk [vmem:[#allocation2] sm:$0xff] %vm942_vm0, %v941_v0 }
  0x35   : > { %946 = vst.msk [vmem:[#allocation3] sm:$0xff] %vm942_vm0, %v944_v1  ;;  %947 = vst.msk [vmem:[#allocation3 + $0x8] sm:$0xff] %vm942_vm0, %v945_v2 }
  0x36 PF: > { %s3563_s1 = sld [smem:[#allocation12_spill]]  ;;  %vm955_vm1 = vcmask 64512   ;;  %v1042_v6 = vld [vmem:[%s3130_s28 + $0x18] sm:$0xff]  ;;  %v2981_v7 = vmov 0.0   ;;  %v1041_v8 = vld [vmem:[%s3130_s28 + $0x10] sm:$0xff]  ;;  %vm2982_vm2 = vmmov 0   ;;  %s3567_s15 = scalar_lea.vmem %s3508_s8, %s3120_s24 }
  0x37   : > { %v1040_v9 = vld [vmem:[%s3130_s28 + $0x8] sm:$0xff]  ;;  %v1039_v10 = vld [vmem:[%s3130_s28] sm:$0xff]  ;;  %vm1050_vm3 = vcmask 261120   ;;  %v1127_v11 = vld [vmem:[%s3135_s4 + $0x18] sm:$0xff]  ;;  %s3564_s6 = sld [smem:[#allocation11_spill]]  ;;  %vm1346_vm4 = vcmask 130048   ;;  %s3569_s25 = scalar_lea.vmem %s3518_s18, %s3120_s24 }
  0x38   : > { %v1126_v12 = vld [vmem:[%s3135_s4 + $0x10] sm:$0xff]  ;;  %v1125_v13 = vld [vmem:[%s3135_s4 + $0x8] sm:$0xff]  ;;  %v1124_v14 = vld [vmem:[%s3135_s4] sm:$0xff]  ;;  %s3565_s2 = sld [smem:[#allocation15_spill]]  ;;  %s2983_s27 = smov 96   ;;  %vm2029_vm7 = vcmask 523264  }
  0x39   : > { %v2662_v28 = vld [vmem:[%s3567_s15] ss:$0 sm:$0xff]  ;;  %s3568_s28 = sld [smem:[#allocation13_spill]]  ;;  %s3572_s9 = scalar_lea.vmem %s3514_s14, %s3120_s24 }
  0x3a   : > { %s3573_s4 = scalar_lea.vmem %s3512_s12, %s3120_s24 }
  0x3b   : > { %v3204_v3 = vld [vmem:[#allocation2] sm:$0xff] }
  0x3c   : > { %v3209_v4 = vld [vmem:[%s3563_s1] sm:$0xff]  ;;  %v3214_v5 = vld [vmem:[%s3563_s1 + $0x8] sm:$0xff]  ;;  %2770 = vmatprep.subr.mxu0 %v3204_v3  ;;  %v3248_v18 = vld [vmem:[#allocation3 + $0x8] sm:$0xff] }
  0x3d   : > { %2772 = vmatprep.mubr.msk.f32.mxu0 %vm955_vm1, %v3209_v4  ;;  %2771 = vmatpush3.msra.mxu0 %v3204_v3  ;;  %v3242_v15 = vld [vmem:[%s3564_s6] sm:$0xff]  ;;  %v3246_v17 = vld [vmem:[#allocation3] sm:$0xff] }
  0x3e   : > { %2773 = vmatmul.mubr.msk.f32.vlgmr.msra.gmra.mxu0 %vm955_vm1, %v3214_v5  ;;  %2775 = vmatprep.subr.mxu0 %v2981_v7  ;;  %s3566_s7 = scalar_lea.vmem %s3565_s2, %s3120_s24  ;;  %v3267_v26 = vld [vmem:[%s3564_s6 + $0x8] sm:$0xff]  ;;  %s2984_s2 = smov 64  }
  0x3f   : > { %2776 = vmatpush3.msra.mxu0 %v1042_v6  ;;  %2783 = vmatprep.mubr.msk.f32.mxu0 %vm2982_vm2, %v2981_v7  ;;  %v2660_v22 = vld [vmem:[%s3566_s7] ss:$0 sm:$0xff]  ;;  %v3288_v36 = vld [vmem:[%s3568_s28 + $0x1] ss:$0 sm:$0xff] }
  0x40   : > { %2777 = vmatprep.subr.mxu0 %v2981_v7  ;;  %2799 = vmatprep.mubr.msk.f32.mxu1 %vm955_vm1, %v3242_v15  ;;  %v3293_v37 = vld [vmem:[%s3568_s28] ss:$0 sm:$0xff] }
  0x41   : > { %2778 = vmatpush3.msra.mxu0 %v1041_v8 }
  0x42   : > { %2779 = vmatprep.subr.mxu0 %v2981_v7 }
  0x43   : > { %2780 = vmatpush3.msra.mxu0 %v1040_v9 }
  0x44   : > { %2781 = vmatprep.subr.mxu0 %v2981_v7 }
  0x45   : > { %2782 = vmatpush3.msra.mxu0 %v1039_v10 }
  0x46   : > { %2784 = vmatmul.mubr.msk.f32.vlgmr.msra.gmra.mxu0 %vm1050_vm3, %v3204_v3  ;;  %2786 = vmatprep.subr.mxu0 %v1127_v11 }
  0x47   : > { %2787 = vmatpush3.msra.mxu0 %v1127_v11 }
  0x48   : > { %2788 = vmatprep.subr.mxu0 %v1126_v12 }
  0x49   : > { %2789 = vmatpush3.msra.mxu0 %v1126_v12 }
  0x4a   : > { %2790 = vmatprep.subr.mxu0 %v1125_v13 }
  0x4b   : > { %2791 = vmatpush3.msra.mxu0 %v1125_v13 }
  0x4c   : > { %2792 = vmatprep.subr.mxu0 %v1124_v14 }
  0x4d   : > { %2793 = vmatpush3.msra.mxu0 %v1124_v14 }
  0x4e   : > { %2802 = vmatprep.subr.mxu0 %v2981_v7 }
  0xfe   : > { %v2774_v16 = vpop.f32.mrf.mxu0 }
  0xff   : > { %v1038_v21 = vmul.f32 %v2774_v16, %v3248_v18 }
 0x100   : > { %v1028_v19 = vpop.f32.mrf.mxu0 }
 0x101   : > { %v1037_v20 = vmul.f32 %v1028_v19, %v3246_v17 }
 0x103   : > { %2794 = vmatprep.mubr.msk.f32.mxu0 %vm1050_vm3, %v1037_v20 }
 0x104   : > { %2795 = vmatmul.mubr.msk.f32.vlgmr.msra.gmra.mxu0 %vm1050_vm3, %v1038_v21 }
 0x105   : > { %2803 = vmatpush3.msra.mxu0 %v3214_v5  ;;  %2806 = vmatprep.mubr.msk.f32.mxu0 %vm2982_vm2, %v2981_v7 }
 0x106   : > { %v1120_v23 = vpop.f32.mrf.mxu0  ;;  %2804 = vmatprep.subr.mxu0 %v2981_v7 }
 0x107   : > { %v1121_v24 = vadd.f32 %v2660_v22, %v1120_v23  ;;  %2805 = vmatpush3.msra.mxu0 %v3209_v4 }
 0x108   : > { %v2785_v25 = vpop.f32.mrf.mxu0  ;;  %2814 = vmatprep.subr.mxu0 %v2981_v7 }
 0x109   : > { %2797 = vmatprep.subr.mxu1 %v1121_v24 }
 0x10a   : > { %2798 = vmatpush3.msra.mxu1 %v1121_v24 }
 0x10b   : > { %2800 = vmatmul.mubr.msk.f32.vlgmr.msra.gmra.mxu1 %vm955_vm1, %v3267_v26 }
 0x10c   : > { %2811 = vmatprep.mubr.msk.f32.mxu1 %vm955_vm1, %v3242_v15 }
 0x1c4   : > { %v2796_v27 = vpop.f32.mrf.mxu0 }
 0x1c5   : > { %v3279_v31 = vadd.f32 %v2796_v27, %v2662_v28 }
 0x1c6   : > { %v1207_v29 = vpop.f32.mrf.mxu0 }
 0x1c7   : > { %v3281_v32 = vadd.f32 %v2662_v28, %v1207_v29 }
 0x1cb   : > { %v2801_v30 = vpop.f32.mrf.mxu1 }
 0x1cc   : > { %v1298_v34 = vmul.f32 %v2801_v30, %v3279_v31 }
 0x1cd   : > { %v1288_v33 = vpop.f32.mrf.mxu1 }
 0x1ce   : > { %v1297_v35 = vmul.f32 %v1288_v33, %v3281_v32  ;;  %v1537_v42 = vmul.f32 %v3288_v36, %v1298_v34  ;;  %v1305_v43 = vmul.f32 %v3293_v37, %v1298_v34 }
 0x1d0   : > { %v1536_v38 = vmul.f32 %v3288_v36, %v1297_v35  ;;  %v1304_v39 = vmul.f32 %v3293_v37, %v1297_v35  ;;  %v1541_v44 = vsel %vm1050_vm3, %v1537_v42, 0.0  ;;  %v1309_v45 = vsel %vm1050_vm3, %v1305_v43, 0.0 }
 0x1d2   : > { %v1538_v40 = vsel %vm1050_vm3, %v1536_v38, 0.0  ;;  %v1306_v41 = vsel %vm1050_vm3, %v1304_v39, 0.0 }
 0x1d3   : > { %1539 = vadd.xlane.f32.xlu1 %v1538_v40  ;;  %1307 = vadd.xlane.f32.xlu0 %v1306_v41 }
 0x1d7   : > { %1542 = vadd.xlane.f32.xlu1 %v1541_v44  ;;  %1310 = vadd.xlane.f32.xlu0 %v1309_v45 }
 0x25c   : > { %v1540_v46 = vpop.xlane.xlu1 %1539  ;;  %v1308_v47 = vpop.xlane.xlu0 %1307 }
 0x25d   : > { %v1544_v48 = vmul.f32 %v1540_v46, %v3242_v15  ;;  %v1312_v49 = vmul.f32 %v1308_v47, %v3242_v15 }
 0x25f   : > { %1546 = vxpose.xlu1.b32.start [1/2] (short) (narrow) %v1544_v48, 8  ;;  %1314 = vxpose.xlu0.b32.start [1/2] (short) (narrow) %v1312_v49, 8 }
 0x260   : > { %v1543_v50 = vpop.xlane.xlu1 %1542  ;;  %v1311_v51 = vpop.xlane.xlu0 %1310 }
 0x261   : > { %v1545_v52 = vmul.f32 %v1543_v50, %v3267_v26  ;;  %v1313_v53 = vmul.f32 %v1311_v51, %v3267_v26 }
 0x263   : > { %1547 = vxpose.xlu1.b32.end [2/2] (short) (narrow) %v1545_v52, 8  ;;  %1315 = vxpose.xlu0.b32.end [2/2] (short) (narrow) %v1313_v53, 8 }
 0x2db   : > { %v1330_v54 = vpop.trf.xlu0  ;;  %v1562_v55 = vpop.trf.xlu1 }
 0x2dc   : > { %2807 = vmatmul.mubr.msk.f32.vlgmr.msra.gmra.mxu0 %vm1346_vm4, %v1330_v54 }
 0x2dd   : > { %2815 = vmatpush3.msra.mxu0 %v3214_v5  ;;  %2818 = vmatprep.mubr.msk.f32.mxu0 %vm2982_vm2, %v2981_v7 }
 0x2de   : > { %2816 = vmatprep.subr.mxu0 %v2981_v7 }
 0x2df   : > { %2817 = vmatpush3.msra.mxu0 %v3209_v4 }
 0x2e0   : > { %2819 = vmatmul.mubr.msk.f32.vlgmr.msra.gmra.mxu0 %vm1346_vm4, %v1562_v55  ;;  %2826 = vmatprep.subr.mxu0 %v2981_v7 }
 0x2e1   : > { %2830 = vmatprep.mubr.msk.f32.mxu0 %vm2982_vm2, %v2981_v7 }
 0x39c   : > { %v1416_v56 = vpop.f32.mrf.mxu0 }
 0x39d   : > { %v1420_v57 = vmul.f32 0.25, %v1416_v56 }
 0x39e   : > { %v2808_v58 = vpop.f32.mrf.mxu0 }
 0x39f   : > { %vm1421_vm5 = vcmp.ne.f32.partialorder %v1420_v57, 0.0 }
 0x3a0   : > { %v1647_v59 = vpop.f32.mrf.mxu0  ;;  %v1422_v60 = vsel %vm1421_vm5, %v1420_v57, -9e+15 }
 0x3a1   : > { %v1651_v61 = vmul.f32 0.25, %v1647_v59  ;;  %v1423_v62 = vsel %vm955_vm1, %v1422_v60, -inf }
 0x3a2   : > { %1424 = vmax.xlane.f32.xlu0 %v1423_v62  ;;  %v2820_v63 = vpop.f32.mrf.mxu0 }
 0x3a3   : > { %vm1652_vm6 = vcmp.ne.f32.partialorder %v1651_v61, 0.0 }
 0x3a4   : > { %v1653_v0 = vsel %vm1652_vm6, %v1651_v61, -9e+15 }
 0x3a5   : > { %v1654_v1 = vsel %vm955_vm1, %v1653_v0, -inf }
 0x3a6   : > { %1655 = vmax.xlane.f32.xlu1 %v1654_v1 }
 0x42b   : > { %v1425_v2 = vpop.xlane.xlu0 %1424 }
 0x42c   : > { %v1426_v6 = vsub.f32 %v1422_v60, %v1425_v2 }
 0x42e   : > { %v1427_v8 = vmul.f32 1.442695, %v1426_v6 }
 0x42f   : > { %v1656_v9 = vpop.xlane.xlu1 %1655 }
 0x430   : > { %2925 = vpow2.f32 %v1427_v8  ;;  %v1657_v10 = vsub.f32 %v1653_v0, %v1656_v9 }
 0x432   : > { %v1658_v11 = vmul.f32 1.442695, %v1657_v10 }
 0x434   : > { %2927 = vpow2.f32 %v1658_v11 }
 0x43d   : > { %v2926_v12 = vpop.eup %2925 }
 0x43e   : > { %v1429_v13 = vsel %vm955_vm1, %v2926_v12, 0.0 }
 0x43f   : > { %1430 = vadd.xlane.f32.xlu0 %v1429_v13  ;;  %v1932_v13 = vld [vmem:[%s3144_s5 + $0x18] sm:$0xff] }
 0x441   : > { %v2928_v14 = vpop.eup %2927 }
 0x442   : > { %v1660_v16 = vsel %vm955_vm1, %v2928_v14, 0.0 }
 0x443   : > { %1661 = vadd.xlane.f32.xlu1 %v1660_v16  ;;  %v1930_v16 = vld [vmem:[%s3144_s5 + $0x8] sm:$0xff] }
 0x454   : > { %1521 = vrot.lane.b32.xlu1 %v3281_v32, %s2983_s27 }
 0x4c8   : > { %v1431_v19 = vpop.xlane.xlu0 %1430 }
 0x4c9   : > { %2929 = vrcp.f32 %v1431_v19  ;;  %v1929_v19 = vld [vmem:[%s3144_s5] sm:$0xff] }
 0x4cc   : > { %v1662_v20 = vpop.xlane.xlu1 %1661 }
 0x4cd   : > { %2931 = vrcp.f32 %v1662_v20  ;;  %v2134_v20 = vld [vmem:[%s3163_s20 + $0x18] sm:$0xff] }
 0x4d6   : > { %v2930_v21 = vpop.eup %2929 }
 0x4d7   : > { %v1433_v22 = vmul.f32 %v2930_v21, %v2926_v12  ;;  %v2021_v21 = vld [vmem:[%s3154_s29 + $0x38] sm:$0xff] }
 0x4d9   : > { %2809 = vmatprep.subr.mxu1 %v1433_v22 }
 0x4da   : > { %v2932_v23 = vpop.eup %2931  ;;  %2810 = vmatpush3.msra.mxu1 %v1433_v22  ;;  %v2020_v22 = vld [vmem:[%s3154_s29 + $0x30] sm:$0xff] }
 0x4db   : > { %2812 = vmatmul.mubr.msk.f32.vlgmr.msra.gmra.mxu1 %vm955_vm1, %v3267_v26  ;;  %v1664_v24 = vmul.f32 %v2932_v23, %v2928_v14  ;;  %v1931_v14 = vld [vmem:[%s3144_s5 + $0x10] sm:$0xff]  ;;  %v2019_v23 = vld [vmem:[%s3154_s29 + $0x28] sm:$0xff]  ;;  %s3574_s5 = scalar_lea.vmem %s3516_s16, %s3120_s24 }
 0x4dc   : > { %2823 = vmatprep.mubr.msk.f32.mxu1 %vm955_vm1, %v3242_v15 }
 0x4dd   : > { %2821 = vmatprep.subr.mxu1 %v1664_v24 }
 0x4de   : > { %2822 = vmatpush3.msra.mxu1 %v1664_v24  ;;  %v2018_v24 = vld [vmem:[%s3154_s29 + $0x20] sm:$0xff] }
 0x4df   : > { %2824 = vmatmul.mubr.msk.f32.vlgmr.msra.gmra.mxu1 %vm955_vm1, %v3267_v26  ;;  %2833 = vmatprep.subr.mxu1 %v2981_v7 }
 0x4e0   : > { %2841 = vmatprep.mubr.msk.f32.mxu1 %vm2982_vm2, %v2981_v7  ;;  %2834 = vmatpush3.msra.mxu1 %v1932_v13 }
 0x4e1   : > { %2835 = vmatprep.subr.mxu1 %v2981_v7 }
 0x4e2   : > { %2836 = vmatpush3.msra.mxu1 %v1931_v14 }
 0x4e3   : > { %2837 = vmatprep.subr.mxu1 %v2981_v7 }
 0x4e4   : > { %2838 = vmatpush3.msra.mxu1 %v1930_v16  ;;  %v2687_v16 = vld [vmem:[%s3574_s5] ss:$0 sm:$0xff] }
 0x4e5   : > { %2839 = vmatprep.subr.mxu1 %v2981_v7 }
 0x4e6   : > { %2840 = vmatpush3.msra.mxu1 %v1929_v19 }
 0x4e7   : > { %2863 = vmatprep.subr.mxu1 %v2134_v20 }
 0x59b   : > { %v2813_v25 = vpop.f32.mrf.mxu1 }
 0x59c   : > { %v1510_v27 = vmul.f32 %v2813_v25, %v3214_v5  ;;  %v2017_v25 = vld [vmem:[%s3154_s29 + $0x18] sm:$0xff] }
 0x59d   : > { %v1500_v28 = vpop.f32.mrf.mxu1 }
 0x59e   : > { %v1509_v29 = vmul.f32 %v1500_v28, %v3209_v4  ;;  %v1514_v30 = vsel %vm955_vm1, %v1510_v27, 0.0 }
 0x59f   : > { %1515 = vadd.xlane.f32.xlu0 %v1514_v30  ;;  %v2825_v33 = vpop.f32.mrf.mxu1 }
 0x5a0   : > { %v1741_v34 = vmul.f32 %v2825_v33, %v3214_v5  ;;  %v1511_v39 = vsel %vm955_vm1, %v1509_v29, 0.0 }
 0x5a1   : > { %v1731_v35 = vpop.f32.mrf.mxu1 }
 0x5a2   : > { %v1740_v38 = vmul.f32 %v1731_v35, %v3209_v4  ;;  %v1745_v40 = vsel %vm955_vm1, %v1741_v34, 0.0  ;;  %v1522_v4 = vpop.permute.xlu1 %1521 }
 0x5a3   : > { %1512 = vadd.xlane.f32.xlu0 %v1511_v39  ;;  %1746 = vadd.xlane.f32.xlu1 %v1745_v40 }
 0x5a4   : > { %v1742_v41 = vsel %vm955_vm1, %v1740_v38, 0.0 }
 0x5a7   : > { %1743 = vadd.xlane.f32.xlu1 %v1742_v41  ;;  %v2676_v41 = vld [vmem:[%s927_s22] ss:$0 sm:$0xff] }
 0x5b9   : > { %1523 = vrot.lane.b32.xlu0 %v3279_v31, %s2983_s27 }
 0x5bd   : > { %1889 = vrot.lane.b32.xlu0 %v3281_v32, %s2984_s2 }
 0x5c1   : > { %1891 = vrot.lane.b32.xlu0 %v3279_v31, %s2984_s2 }
 0x5da   : > { %1754 = vxpose.xlu1.b32.start [1/2] (short) (narrow) %v3242_v15, 8 }
 0x5de   : > { %1755 = vxpose.xlu1.b32.end [2/2] (short) (narrow) %v3267_v26, 8 }
 0x628   : > { %v1516_v5 = vpop.xlane.xlu0 %1515 }
 0x629   : > { %v1518_v44 = vmul.f32 %v3293_v37, %v1516_v5  ;;  %v2677_v5 = vld [vmem:[%s3569_s25] ss:$0 sm:$0xff] }
 0x62c   : > { %v1513_v42 = vpop.xlane.xlu0 %1512  ;;  %v1747_v43 = vpop.xlane.xlu1 %1746 }
 0x62d   : > { %v1517_v45 = vmul.f32 %v3293_v37, %v1513_v42  ;;  %v1749_v46 = vmul.f32 %v3288_v36, %v1747_v43 }
 0x62f   : > { %v1527_v50 = vmul.f32 %v1522_v4, %v1517_v45 }
 0x630   : > { %v1524_v47 = vpop.permute.xlu0 %1523  ;;  %v1744_v48 = vpop.xlane.xlu1 %1743 }
 0x631   : > { %v1528_v49 = vmul.f32 %v1524_v47, %v1518_v44  ;;  %v1751_v32 = vmul.f32 %v1749_v46, %v1524_v47  ;;  %v1748_v31 = vmul.f32 %v3288_v36, %v1744_v48  ;;  %v2133_v46 = vld [vmem:[%s3163_s20 + $0x10] sm:$0xff] }
 0x633   : > { %v1753_v15 = vadd.f32 %v1751_v32, %v1528_v49  ;;  %v1750_v51 = vmul.f32 %v1748_v31, %v1522_v4  ;;  %v2132_v49 = vld [vmem:[%s3163_s20 + $0x8] sm:$0xff] }
 0x634   : > { %v1890_v26 = vpop.permute.xlu0 %1889 }
 0x635   : > { %v1752_v52 = vadd.f32 %v1750_v51, %v1527_v50  ;;  %2827 = vmatpush3.msra.mxu0 %v1753_v15  ;;  %v1895_v58 = vadd.f32 %v1890_v26, %v3246_v17  ;;  %v2131_v50 = vld [vmem:[%s3163_s20] sm:$0xff]  ;;  %v2016_v26 = vld [vmem:[%s3154_s29 + $0x10] sm:$0xff]  ;;  %s3570_s20 = sld [smem:[#allocation18_spill]] }
 0x636   : > { %2828 = vmatprep.subr.mxu0 %v2981_v7 }
 0x637   : > { %2829 = vmatpush3.msra.mxu0 %v1752_v52  ;;  %v2232_v52 = vld [vmem:[%s3172_s10 + $0x38] sm:$0xff] }
 0x638   : > { %v1892_v53 = vpop.permute.xlu0 %1891  ;;  %2844 = vmatprep.subr.mxu0 %v2981_v7 }
 0x639   : > { %v1896_v37 = vadd.f32 %v1892_v53, %v3248_v18  ;;  %v1897_v18 = vsel %vm1050_vm3, %v1895_v58, 0.0  ;;  %v2015_v53 = vld [vmem:[%s3154_s29 + $0x8] sm:$0xff] }
 0x63b   : > { %v1900_v54 = vsel %vm1050_vm3, %v1896_v37, 0.0  ;;  %s3571_s13 = scalar_lea.vmem %s3570_s20, %s3120_s24  ;;  %s3576_s24 = sld [smem:[#allocation8_spill]] }
 0x63c   : > { %1901 = vadd.xlane.f32.xlu1 %v1900_v54  ;;  %v2014_v54 = vld [vmem:[%s3154_s29] sm:$0xff] }
 0x641   : > { %p2690_p5 = scmp.ne.s32.totalorder %s3576_s24, 1 }
 0x642   : > { %s3577_s22 = sld [smem:[#allocation23_spill]] (!%p2690_p5) }
 0x643   : > { %s3578_s27 = sld [smem:[#allocation24_spill]] (!%p2690_p5) }
 0x656   : > { %v1770_v55 = vpop.trf.xlu1 }
 0x657   : > { %2831 = vmatmul.mubr.msk.f32.vlgmr.msra.gmra.mxu0 %vm1346_vm4, %v1770_v55  ;;  %v2230_v55 = vld [vmem:[%s3172_s10 + $0x28] sm:$0xff] }
 0x658   : > { %2860 = vmatprep.mubr.msk.f32.mxu0 %vm2982_vm2, %v2981_v7  ;;  %2845 = vmatpush3.msra.mxu0 %v2021_v21 }
 0x659   : > { %2846 = vmatprep.subr.mxu0 %v2981_v7 }
 0x65a   : > { %2847 = vmatpush3.msra.mxu0 %v2020_v22 }
 0x65b   : > { %2848 = vmatprep.subr.mxu0 %v2981_v7 }
 0x65c   : > { %2849 = vmatpush3.msra.mxu0 %v2019_v23 }
 0x65d   : > { %2850 = vmatprep.subr.mxu0 %v2981_v7 }
 0x65e   : > { %2851 = vmatpush3.msra.mxu0 %v2018_v24 }
 0x65f   : > { %2852 = vmatprep.subr.mxu0 %v2981_v7 }
 0x660   : > { %2853 = vmatpush3.msra.mxu0 %v2017_v25 }
 0x661   : > { %2854 = vmatprep.subr.mxu0 %v2981_v7 }
 0x662   : > { %2855 = vmatpush3.msra.mxu0 %v2016_v26  ;;  %v2683_v26 = vld [vmem:[%s936_s26] ss:$0 sm:$0xff] }
 0x663   : > { %2856 = vmatprep.subr.mxu0 %v2981_v7 }
 0x664   : > { %2857 = vmatpush3.msra.mxu0 %v2015_v53 }
 0x665   : > { %2858 = vmatprep.subr.mxu0 %v2981_v7  ;;  %v2226_v7 = vld [vmem:[%s3172_s10 + $0x8] sm:$0xff] }
 0x666   : > { %2859 = vmatpush3.msra.mxu0 %v2014_v54 }
 0x6c5   : > { %v1902_v60 = vpop.xlane.xlu1 %1901 }
 0x6c6   : > { %v1904_v63 = vmul.f32 0.03125, %v1902_v60 }
 0x717   : > { %v1855_v36 = vpop.f32.mrf.mxu0 }
 0x718   : > { %v1861_v56 = vadd.f32 %v1855_v36, %v3204_v3  ;;  %v3361_v3 = vsub.f32 %v1896_v37, %v1904_v63  ;;  %v2231_v37 = vld [vmem:[%s3172_s10 + $0x30] sm:$0xff]  ;;  %v2229_v36 = vld [vmem:[%s3172_s10 + $0x20] sm:$0xff] }
 0x719   : > { %v2832_v57 = vpop.f32.mrf.mxu0  ;;  %v2684_v63 = vld [vmem:[%s3572_s9] ss:$0 sm:$0xff] }
 0x71a   : > { %v1862_v59 = vsel %vm1050_vm3, %v1861_v56, 0.0  ;;  %v1908_v11 = vmul.f32 %v3361_v3, %v3361_v3  ;;  %v2227_v57 = vld [vmem:[%s3172_s10 + $0x10] sm:$0xff] }
 0x71b   : > { %1863 = vadd.xlane.f32.xlu0 %v1862_v59  ;;  %v2678_v59 = vld [vmem:[%s3571_s13] ss:$0 sm:$0xff] }
 0x71c   : > { %v1912_v12 = vsel %vm1050_vm3, %v1908_v11, 0.0 }
 0x71f   : > { %1898 = vadd.xlane.f32.xlu0 %v1897_v18 }
 0x7a4   : > { %v1864_v61 = vpop.xlane.xlu0 %1863 }
 0x7a5   : > { %v1865_v62 = vmul.f32 0.03125, %v1864_v61 }
 0x7a7   : > { %v1866_v0 = vsub.f32 %v1861_v56, %v1865_v62  ;;  %v2228_v56 = vld [vmem:[%s3172_s10 + $0x18] sm:$0xff] }
 0x7a8   : > { %v1899_v1 = vpop.xlane.xlu0 %1898 }
 0x7a9   : > { %v1903_v2 = vmul.f32 0.03125, %v1899_v1  ;;  %v1867_v6 = vmul.f32 %v1866_v0, %v1866_v0 }
 0x7ab   : > { %v1905_v17 = vsub.f32 %v1895_v58, %v1903_v2  ;;  %v1868_v8 = vsel %vm1050_vm3, %v1867_v6, 0.0  ;;  %v2225_v58 = vld [vmem:[%s3172_s10] sm:$0xff] }
 0x7ac   : > { %1869 = vadd.xlane.f32.xlu0 %v1868_v8  ;;  %v2680_v8 = vld [vmem:[%s3573_s4] ss:$0 sm:$0xff] }
 0x7ad   : > { %v1907_v9 = vmul.f32 %v1905_v17, %v1905_v17 }
 0x7af   : > { %v1909_v10 = vsel %vm1050_vm3, %v1907_v9, 0.0 }
 0x7b0   : > { %1910 = vadd.xlane.f32.xlu0 %v1909_v10 }
 0x7b4   : > { %1913 = vadd.xlane.f32.xlu0 %v1912_v12 }
 0x835   : > { %v1870_v27 = vpop.xlane.xlu0 %1869 }
 0x836   : > { %v1871_v28 = vmul.f32 0.03125, %v1870_v27 }
 0x838   : > { %v1872_v29 = vadd.f32 1e-05, %v1871_v28 }
 0x839   : > { %v1911_v30 = vpop.xlane.xlu0 %1910 }
 0x83a   : > { %2933 = vrsqrt.f32 %v1872_v29  ;;  %v1915_v33 = vmul.f32 0.03125, %v1911_v30 }
 0x83c   : > { %v1917_v34 = vadd.f32 1e-05, %v1915_v33 }
 0x83d   : > { %v1914_v35 = vpop.xlane.xlu0 %1913 }
 0x83e   : > { %2935 = vrsqrt.f32 %v1917_v34  ;;  %v1916_v38 = vmul.f32 0.03125, %v1914_v35 }
 0x840   : > { %v1918_v39 = vadd.f32 1e-05, %v1916_v38 }
 0x842   : > { %2937 = vrsqrt.f32 %v1918_v39 }
 0x847   : > { %v2934_v40 = vpop.eup %2933 }
 0x848   : > { %v1874_v4 = vmul.f32 %v2934_v40, %v1866_v0 }
 0x84a   : > { %v1881_v42 = vmul.f32 %v2676_v41, %v1874_v4 }
 0x84b   : > { %v2936_v43 = vpop.eup %2935 }
 0x84c   : > { %v3396_v44 = vadd.f32 %v2677_v5, %v1881_v42  ;;  %v1921_v45 = vmul.f32 %v2936_v43, %v1905_v17 }
 0x84e   : > { %2842 = vmatmul.mubr.msk.f32.vlgmr.msra.gmra.mxu1 %vm1050_vm3, %v3396_v44  ;;  %v1923_v47 = vmul.f32 %v2676_v41, %v1921_v45 }
 0x84f   : > { %v2938_v48 = vpop.eup %2937  ;;  %2864 = vmatpush3.msra.mxu1 %v2134_v20 }
 0x850   : > { %v1922_v32 = vmul.f32 %v2938_v48, %v3361_v3  ;;  %2865 = vmatprep.subr.mxu1 %v2133_v46  ;;  %v3403_v31 = vadd.f32 %v2677_v5, %v1923_v47 }
 0x851   : > { %2866 = vmatpush3.msra.mxu1 %v2133_v46 }
 0x852   : > { %2867 = vmatprep.subr.mxu1 %v2132_v49  ;;  %2871 = vmatprep.mubr.msk.f32.mxu1 %vm1050_vm3, %v3403_v31  ;;  %v1924_v15 = vmul.f32 %v2676_v41, %v1922_v32 }
 0x853   : > { %2868 = vmatpush3.msra.mxu1 %v2132_v49 }
 0x854   : > { %2869 = vmatprep.subr.mxu1 %v2131_v50  ;;  %v3408_v51 = vadd.f32 %v2677_v5, %v1924_v15 }
 0x855   : > { %2870 = vmatpush3.msra.mxu1 %v2131_v50  ;;  %v2682_v50 = vld [vmem:[%s933_s30] ss:$0 sm:$0xff] }
 0x856   : > { %2872 = vmatmul.mubr.msk.f32.vlgmr.msra.gmra.mxu1 %vm1050_vm3, %v3408_v51  ;;  %2874 = vmatprep.subr.mxu1 %v2232_v52 }
 0x857   : > { %2875 = vmatpush3.msra.mxu1 %v2232_v52 }
 0x858   : > { %2876 = vmatprep.subr.mxu1 %v2231_v37 }
 0x859   : > { %2877 = vmatpush3.msra.mxu1 %v2231_v37 }
 0x85a   : > { %2878 = vmatprep.subr.mxu1 %v2230_v55 }
 0x85b   : > { %2879 = vmatpush3.msra.mxu1 %v2230_v55 }
 0x85c   : > { %2880 = vmatprep.subr.mxu1 %v2229_v36 }
 0x85d   : > { %2881 = vmatpush3.msra.mxu1 %v2229_v36 }
 0x85e   : > { %2882 = vmatprep.subr.mxu1 %v2228_v56 }
 0x85f   : > { %2883 = vmatpush3.msra.mxu1 %v2228_v56 }
 0x860   : > { %2884 = vmatprep.subr.mxu1 %v2227_v57 }
 0x861   : > { %2885 = vmatpush3.msra.mxu1 %v2227_v57 }
 0x862   : > { %2886 = vmatprep.subr.mxu1 %v2226_v7 }
 0x863   : > { %2887 = vmatpush3.msra.mxu1 %v2226_v7 }
 0x864   : > { %2888 = vmatprep.subr.mxu1 %v2225_v58 }
 0x865   : > { %2889 = vmatpush3.msra.mxu1 %v2225_v58 }
 0x90e   : > { %v2009_v18 = vpop.f32.mrf.mxu1 }
 0x90f   : > { %v2010_v60 = vadd.f32 %v2678_v59, %v2009_v18 }
 0x910   : > { %v2843_v61 = vpop.f32.mrf.mxu1 }
 0x911   : > { %v2013_v62 = vmax.f32 %v2010_v60, 0.0 }
 0x913   : > { %2861 = vmatmul.mubr.msk.f32.vlgmr.msra.gmra.mxu0 %vm2029_vm7, %v2013_v62 }
 0x916   : > { %v2873_v0 = vpop.f32.mrf.mxu1 }
 0x917   : > { %v2220_v1 = vadd.f32 %v2873_v0, %v2684_v63 }
 0x918   : > { %v2214_v2 = vpop.f32.mrf.mxu1 }
 0x919   : > { %v2215_v6 = vadd.f32 %v2684_v63, %v2214_v2  ;;  %v2224_v17 = vmax.f32 %v2220_v1, 0.0 }
 0x91b   : > { %v2223_v3 = vmax.f32 %v2215_v6, 0.0 }
 0x91d   : > { %2890 = vmatprep.mubr.msk.f32.mxu1 %vm2029_vm7, %v2223_v3 }
 0x91e   : > { %2891 = vmatmul.mubr.msk.f32.vlgmr.msra.gmra.mxu1 %vm2029_vm7, %v2224_v17 }
 0x9d3   : > { %v2099_v9 = vpop.f32.mrf.mxu0 }
 0x9d4   : > { %v2100_v10 = vadd.f32 %v2680_v8, %v2099_v9 }
 0x9d5   : > { %v2862_v11 = vpop.f32.mrf.mxu0 }
 0x9d6   : > { %v2103_v12 = vadd.f32 %v2100_v10, %v3396_v44 }
 0x9d8   : > { %v2104_v13 = vsel %vm1050_vm3, %v2103_v12, 0.0 }
 0x9d9   : > { %2105 = vadd.xlane.f32.xlu0 %v2104_v13 }
 0x9de   : > { %v2892_v14 = vpop.f32.mrf.mxu1 }
 0x9df   : > { %v2318_v20 = vadd.f32 %v2892_v14, %v2687_v16 }
 0x9e0   : > { %v2312_v19 = vpop.f32.mrf.mxu1 }
 0x9e1   : > { %v2313_v21 = vadd.f32 %v2687_v16, %v2312_v19  ;;  %v2322_v24 = vadd.f32 %v2318_v20, %v3408_v51 }
 0x9e3   : > { %v2321_v22 = vadd.f32 %v2313_v21, %v3403_v31  ;;  %v2326_v25 = vsel %vm1050_vm3, %v2322_v24, 0.0 }
 0x9e5   : > { %v2323_v23 = vsel %vm1050_vm3, %v2321_v22, 0.0 }
 0x9e6   : > { %2324 = vadd.xlane.f32.xlu0 %v2323_v23 }
 0x9ea   : > { %2327 = vadd.xlane.f32.xlu0 %v2326_v25 }
 0xa62   : > { %v2106_v27 = vpop.xlane.xlu0 %2105 }
 0xa63   : > { %v2107_v28 = vmul.f32 0.03125, %v2106_v27 }
 0xa65   : > { %v2108_v29 = vsub.f32 %v2103_v12, %v2107_v28 }
 0xa67   : > { %v2109_v30 = vmul.f32 %v2108_v29, %v2108_v29 }
 0xa69   : > { %v2110_v33 = vsel %vm1050_vm3, %v2109_v30, 0.0 }
 0xa6a   : > { %2111 = vadd.xlane.f32.xlu0 %v2110_v33 }
 0xa6f   : > { %v2325_v34 = vpop.xlane.xlu0 %2324 }
 0xa70   : > { %v2329_v35 = vmul.f32 0.03125, %v2325_v34 }
 0xa72   : > { %v2331_v38 = vsub.f32 %v2321_v22, %v2329_v35 }
 0xa73   : > { %v2328_v39 = vpop.xlane.xlu0 %2327 }
 0xa74   : > { %v2330_v40 = vmul.f32 0.03125, %v2328_v39  ;;  %v2333_v41 = vmul.f32 %v2331_v38, %v2331_v38 }
 0xa76   : > { %v2332_v4 = vsub.f32 %v2322_v24, %v2330_v40  ;;  %v2335_v5 = vsel %vm1050_vm3, %v2333_v41, 0.0 }
 0xa77   : > { %2336 = vadd.xlane.f32.xlu0 %v2335_v5 }
 0xa78   : > { %v2334_v42 = vmul.f32 %v2332_v4, %v2332_v4 }
 0xa7a   : > { %v2338_v43 = vsel %vm1050_vm3, %v2334_v42, 0.0 }
 0xa7b   : > { %2339 = vadd.xlane.f32.xlu0 %v2338_v43 }
 0xaf3   : > { %v2112_v44 = vpop.xlane.xlu0 %2111 }
 0xaf4   : > { %v2113_v45 = vmul.f32 0.03125, %v2112_v44 }
 0xaf6   : > { %v2114_v46 = vadd.f32 1e-05, %v2113_v45 }
 0xaf8   : > { %2939 = vrsqrt.f32 %v2114_v46 }
 0xb00   : > { %v2337_v47 = vpop.xlane.xlu0 %2336 }
 0xb01   : > { %v2341_v48 = vmul.f32 0.03125, %v2337_v47 }
 0xb03   : > { %v2343_v49 = vadd.f32 1e-05, %v2341_v48 }
 0xb04   : > { %v2340_v32 = vpop.xlane.xlu0 %2339 }
 0xb05   : > { %v2940_v31 = vpop.eup %2939  ;;  %2941 = vrsqrt.f32 %v2343_v49  ;;  %v2342_v15 = vmul.f32 0.03125, %v2340_v32 }
 0xb06   : > { %v2116_v51 = vmul.f32 %v2940_v31, %v2108_v29 }
 0xb07   : > { %v2344_v52 = vadd.f32 1e-05, %v2342_v15 }
 0xb08   : > { %v2123_v53 = vmul.f32 %v2682_v50, %v2116_v51 }
 0xb09   : > { %2943 = vrsqrt.f32 %v2344_v52 }
 0xb0a   : > { %v2130_v37 = vadd.f32 %v2683_v26, %v2123_v53 }
 0xb0c   : > { %2353 = vst.msk [vmem:[#allocation2] sm:$0xff] %vm1050_vm3, %v2130_v37 }
 0xb12   : > { %v2942_v54 = vpop.eup %2941 }
 0xb13   : > { %v2347_v55 = vmul.f32 %v2942_v54, %v2331_v38 }
 0xb15   : > { %v2349_v36 = vmul.f32 %v2682_v50, %v2347_v55 }
 0xb16   : > { %v2944_v56 = vpop.eup %2943 }
 0xb17   : > { %v2351_v57 = vadd.f32 %v2683_v26, %v2349_v36  ;;  %v2348_v7 = vmul.f32 %v2944_v56, %v2332_v4 }
 0xb19   : > { %2354 = vst.msk [vmem:[#allocation3] sm:$0xff] %vm1050_vm3, %v2351_v57  ;;  %v2350_v58 = vmul.f32 %v2682_v50, %v2348_v7  ;;  %2359 = sbr.rel (%p2690_p5) target bundleno = 3051 (0xbeb), region = 120 }
 0xb1b   : > { %v2352_v59 = vadd.f32 %v2683_v26, %v2350_v58 }
 0xb1d   : > { %2355 = vst.msk [vmem:[#allocation3 + $0x8] sm:$0xff] %vm1050_vm3, %v2352_v59 }
 0xb1e   : > { %v2363_v18 = vld [vmem:[%s3577_s22 + $0x18] sm:$0xff]  ;;  %v2985_v60 = vmov 0.0   ;;  %v2362_v61 = vld [vmem:[%s3577_s22 + $0x10] sm:$0xff]  ;;  %vm2986_vm8 = vmmov 0   ;;  %v2361_v62 = vld [vmem:[%s3577_s22 + $0x8] sm:$0xff] }
 0xb1f   : > { %2893 = vmatprep.subr.mxu0 %v2985_v60  ;;  %2901 = vmatprep.mubr.msk.f32.mxu0 %vm2986_vm8, %v2985_v60  ;;  %v2360_v63 = vld [vmem:[%s3577_s22] sm:$0xff] }
 0xb20   : > { %2894 = vmatpush3.msra.mxu0 %v2363_v18  ;;  %v2691_v0 = vld [vmem:[%s3578_s27] ss:$0 sm:$0xff] }
 0xb21   : > { %2895 = vmatprep.subr.mxu0 %v2985_v60 }
 0xb22   : > { %2896 = vmatpush3.msra.mxu0 %v2362_v61 }
 0xb23   : > { %2897 = vmatprep.subr.mxu0 %v2985_v60 }
 0xb24   : > { %2898 = vmatpush3.msra.mxu0 %v2361_v62 }
 0xb25   : > { %2899 = vmatprep.subr.mxu0 %v2985_v60 }
 0xb26   : > { %2900 = vmatpush3.msra.mxu0 %v2360_v63 }
 0xb27   : > { %2902 = vmatmul.mubr.msk.f32.vlgmr.msra.gmra.mxu0 %vm1050_vm3, %v2130_v37 }
 0xbe7   : > { %v2440_v1 = vpop.f32.mrf.mxu0 }
 0xbe8   : > { %v2441_v2 = vadd.f32 %v2691_v0, %v2440_v1 }
 0xbe9   : > { %v2903_v6 = vpop.f32.mrf.mxu0 }
 0xbea   : > { %2444 = vst.msk [vmem:[#allocation4] sm:$0xff] %vm1346_vm4, %v2441_v2 }
 0xbeb PF: > { %s3579_s2 = sld [smem:[#allocation8_spill]]  ;;  %s2987_s5 = smov [#allocation4]  }
 0xbec   : > { %s2452_s7 = sshll.u32 %s2987_s5, 4  ;;  %s2453_s7 = int_to_ptr.vmem [resolvable:$true] %s2452_s7 }
 0xbed   : > { %s2945_s3 = scalar_lea.vmem %s2453_s7, 128  ;;  %p2952_p10 = scmp.lt.s32.totalorder %s2453_s7, %s2453_s7 }
 0xbee   : > { %p2946_p7 = scmp.ne.s32.totalorder %s2453_s7, %s2945_s3  ;;  %p2953_p11 = scmp.lt.s32.totalorder %s2945_s3, %s2945_s3 }
 0xbf0   : > { %p2954_p12 = por %p2953_p11, %p2952_p10 }
 0xbf1   : > { %p2908_p6 = scmp.eq.s32.totalorder %s3579_s2, 1 }
 0xbf3   : > { %p2947_p8 = pnand %p2946_p7, %p2908_p6 }
 0xbf5   : > { %p2948_p9 = pneg %p2947_p8 }
 0xbf7   : > { %p2955_p13 = pnand %p2954_p12, %p2948_p9 }
 0xbf9   : > { %2958 = shalt.err (!%p2955_p13)
}
 0xbfa   : > { %s3580_s29 = sld [smem:[#allocation25_spill]] }
 0xc00   : > { %2905 = dma.vmem_to_hbm [thread:$0]  (%p2908_p6), %s2453_s7, 128, %s3580_s29, [#allocation5]  }
 0xc01   : > { %2974 = dma.done.wait (%p2908_p6), [#allocation5], 128  }
 0xc02   : > { %2976 = vsyncadd (%p2908_p6), [#allocation5], 4294967168 }
 0xc03 PF: > { %s3581_s24 = sld [smem:[#allocation7_spill]] }
 0xc09   : > { %s34_s4 = sadd.s32 1, %s3581_s24  }
 0xc0a   : > { %p31_p0 = scmp.ge.s32.totalorder %s34_s4, 4  }
 0xc0c   :  { %33 = sbr.rel (!%p31_p0) target bundleno = 19 (0x13), region = 192 }
 0xc11   :  { %2465 = vsyncpa [#allocation5], 1 }
 0xc12   :  { %2467 = vsyncpa [#allocation5 + $0x1], 1 }

</bundles_post_ra>
